<compile_context>
chip_gen: v7x
topology: tpu7x:2x2x1
jax: 0.10.0
libtpu: 0.0.40
codegen_flags: <defaults>
</compile_context>

<pallas_src>
import jax
import jax.numpy as jnp
from jax.experimental import pallas as pl
from jax.experimental.pallas import tpu as pltpu

dropout = 0.2          # nn.LSTM inter-layer dropout (train-only; eval forward omits it)
embedding_dim = 100    # same global as the PyTorch file

_VMEM_LIMIT = 32 * 1024 * 1024          # explicit scoped-VMEM request (safe on v5e/v6e/v7x)
_PROJ_ROW_BUDGET = 8 * 1024 * 1024      # per-operand row-slab budget for projection tiling


def _round_up(x, m):
    return (x + m - 1) // m * m


def _row_block(n_rows, row_bytes, budget=_PROJ_ROW_BUDGET):
    """Row tile for the projection matmuls: multiple of 8 dividing n_rows, sized so the
    double-buffered row slabs (~4x row bytes) stay within `budget`; else full n_rows."""
    cap = max(8, budget // max(4 * row_bytes, 1))
    if n_rows <= cap:
        return n_rows
    best = n_rows
    b = 8
    while b <= cap:
        if n_rows % b == 0:
            best = b
        b += 8
    return best


def _batch_tile(b):
    """Batch tile for the recurrence: keep the full batch per step up to 128 rows (feed
    the MXU); above that, largest multiple-of-8 divisor (extra tiles shard across cores)."""
    if b <= 128 or b % 8 != 0:
        return b
    bt = 128
    while bt >= 8:
        if b % bt == 0:
            return bt
        bt -= 8
    return b


# ---------------------------------------------------------------------------
# Input projections: one big matmul over all timesteps, both directions at once.
# Weight columns = [fwd 4H | bwd 4H]; gate order per direction = [i, f, o, g].
# Biases folded in; outputs emitted in bf16, split per direction.
# ---------------------------------------------------------------------------
def _proj1_kernel(x_ref, w_ref, b_ref, gf_ref, gb_ref):
    x = x_ref[...].astype(w_ref.dtype)                       # bf16 MXU input
    g = jnp.dot(x, w_ref[...], preferred_element_type=jnp.float32) + b_ref[...]
    g4 = gf_ref.shape[1]
    gf_ref[...] = g[:, :g4].astype(gf_ref.dtype)
    gb_ref[...] = g[:, g4:].astype(gb_ref.dtype)


def _proj2_kernel(xf_ref, xb_ref, wf_ref, wb_ref, b_ref, gf_ref, gb_ref):
    # Consumes the previous layer's fwd / bwd outputs directly (split-K, no host concat).
    g = (jnp.dot(xf_ref[...], wf_ref[...], preferred_element_type=jnp.float32)
         + jnp.dot(xb_ref[...], wb_ref[...], preferred_element_type=jnp.float32)
         + b_ref[...])
    g4 = gf_ref.shape[1]
    gf_ref[...] = g[:, :g4].astype(gf_ref.dtype)
    gb_ref[...] = g[:, g4:].astype(gb_ref.dtype)


def input_projection(x2d, w, b):
    N, Din = x2d.shape
    G = w.shape[1]
    bn = _row_block(N, 4 * Din + 2 * G)
    return pl.pallas_call(
        _proj1_kernel,
        out_shape=(jax.ShapeDtypeStruct((N, G // 2), jnp.bfloat16),
                   jax.ShapeDtypeStruct((N, G // 2), jnp.bfloat16)),
        grid=(N // bn,),
        in_specs=[pl.BlockSpec((bn, Din), lambda i: (i, 0)),
                  pl.BlockSpec((Din, G), lambda i: (0, 0)),
                  pl.BlockSpec((1, G), lambda i: (0, 0))],
        out_specs=(pl.BlockSpec((bn, G // 2), lambda i: (i, 0)),
                   pl.BlockSpec((bn, G // 2), lambda i: (i, 0))),
        compiler_params=pltpu.CompilerParams(
            dimension_semantics=("parallel",), vmem_limit_bytes=_VMEM_LIMIT),
    )(x2d, w, b)


def input_projection_dual(xf2d, xb2d, wf, wb, b):
    N, H = xf2d.shape
    G = wf.shape[1]
    bn = _row_block(N, 4 * H + 2 * G)
    return pl.pallas_call(
        _proj2_kernel,
        out_shape=(jax.ShapeDtypeStruct((N, G // 2), jnp.bfloat16),
                   jax.ShapeDtypeStruct((N, G // 2), jnp.bfloat16)),
        grid=(N // bn,),
        in_specs=[pl.BlockSpec((bn, H), lambda i: (i, 0)),
                  pl.BlockSpec((bn, H), lambda i: (i, 0)),
                  pl.BlockSpec((H, G), lambda i: (0, 0)),
                  pl.BlockSpec((H, G), lambda i: (0, 0)),
                  pl.BlockSpec((1, G), lambda i: (0, 0))],
        out_specs=(pl.BlockSpec((bn, G // 2), lambda i: (i, 0)),
                   pl.BlockSpec((bn, G // 2), lambda i: (i, 0))),
        compiler_params=pltpu.CompilerParams(
            dimension_semantics=("parallel",), vmem_limit_bytes=_VMEM_LIMIT),
    )(xf2d, xb2d, wf, wb, b)


# ---------------------------------------------------------------------------
# Bidirectional recurrence: grid = (batch_tiles, T).  gin_f / gin_b are streamed per
# timestep (fwd indexed t, bwd indexed T-1-t).  State lives in a (2*Bt, H) f32 scratch
# (rows 0:Bt fwd, Bt:2Bt bwd).  Last layer fuses fc + sigmoid at t == T-1.
# ---------------------------------------------------------------------------
def _make_recurrence_kernel(last_layer, T):
    def kernel(*refs):
        if last_layer:
            (gf_ref, gb_ref, len_ref, whf_ref, whb_ref,
             fwf_ref, fwb_ref, fb_ref, out_ref, h_s, c_s) = refs
        else:
            gf_ref, gb_ref, len_ref, whf_ref, whb_ref, yf_ref, yb_ref, h_s, c_s = refs

        t = pl.program_id(1)
        Bt = h_s.shape[0] // 2
        H = h_s.shape[1]

        @pl.when(t == 0)
        def _():
            h_s[...] = jnp.zeros_like(h_s)
            c_s[...] = jnp.zeros_like(c_s)

        lens = len_ref[...]                                   # (Bt, 1) int32
        row = jax.lax.broadcasted_iota(jnp.int32, (2 * Bt, 1), 0)
        tq = jnp.where(row < Bt, t, T - 1 - t)                # query time per stacked row
        lens2 = jnp.concatenate([lens, lens], axis=0)         # (2Bt, 1)
        m2 = tq < lens2                                       # packed-sequence masks
        mf, mb = m2[:Bt], m2[Bt:]

        # two small bf16 recurrent dots (one per direction), f32 accumulation
        h_bf = h_s[...].astype(whf_ref.dtype)                 # (2Bt, H) bf16
        rec_f = jnp.dot(h_bf[:Bt], whf_ref[...], preferred_element_type=jnp.float32)
        rec_b = jnp.dot(h_bf[Bt:], whb_ref[...], preferred_element_type=jnp.float32)

        gf = gf_ref[0].astype(jnp.float32) + rec_f            # (Bt, 4H) gates at time t
        gb = gb_ref[0].astype(jnp.float32) + rec_b            # (Bt, 4H) gates at T-1-t
        g2 = jnp.concatenate([gf, gb], axis=0)                # (2Bt, 4H) sublane-stacked

        # gate layout per direction [i, f, o | g] -> ONE sigmoid + ONE tanh for both dirs
        s = jax.nn.sigmoid(g2[:, :3 * H])
        gg = jnp.tanh(g2[:, 3 * H:])
        i_g, f_g, o_g = s[:, :H], s[:, H:2 * H], s[:, 2 * H:]

        c_new = f_g * c_s[...] + i_g * gg
        h_new = o_g * jnp.tanh(c_new)

        h_s[...] = jnp.where(m2, h_new, h_s[...])
        c_s[...] = jnp.where(m2, c_new, c_s[...])

        if not last_layer:
            yf_ref[0] = jnp.where(mf, h_new[:Bt], 0.0).astype(yf_ref.dtype)
            yb_ref[0] = jnp.where(mb, h_new[Bt:], 0.0).astype(yb_ref.dtype)
        else:
            @pl.when(t == T - 1)
            def _():
                hv = h_s[...]
                hf = hv[:Bt].astype(fwf_ref.dtype)
                hb = hv[Bt:].astype(fwb_ref.dtype)
                logits = (jnp.dot(hf, fwf_ref[...], preferred_element_type=jnp.float32)
                          + jnp.dot(hb, fwb_ref[...], preferred_element_type=jnp.float32)
                          + fb_ref[...])
                out_ref[...] = jax.nn.sigmoid(logits)

    return kernel


def lstm_bidir_recurrence(gin_f, gin_b, lens, w_hh_f, w_hh_b,
                          fc_w_f=None, fc_w_b=None, fc_b=None):
    T, B, G4 = gin_f.shape
    H = G4 // 4
    Bt = _batch_tile(B)
    nb = B // Bt
    last = fc_w_f is not None

    in_specs = [
        pl.BlockSpec((1, Bt, G4), lambda b, t: (t, b, 0)),           # fwd gin stream
        pl.BlockSpec((1, Bt, G4), lambda b, t: (T - 1 - t, b, 0)),   # bwd gin stream
        pl.BlockSpec((Bt, 1), lambda b, t: (b, 0)),                  # lengths
        pl.BlockSpec((H, G4), lambda b, t: (0, 0)),                  # W_hh fwd (bf16)
        pl.BlockSpec((H, G4), lambda b, t: (0, 0)),                  # W_hh bwd (bf16)
    ]
    if last:
        O = fc_w_f.shape[1]
        in_specs += [pl.BlockSpec((H, O), lambda b, t: (0, 0)),
                     pl.BlockSpec((H, O), lambda b, t: (0, 0)),
                     pl.BlockSpec((1, O), lambda b, t: (0, 0))]
        out_shape = jax.ShapeDtypeStruct((B, O), jnp.float32)
        out_specs = pl.BlockSpec((Bt, O), lambda b, t: (b, 0))       # resident accumulator
        args = (gin_f, gin_b, lens, w_hh_f, w_hh_b, fc_w_f, fc_w_b, fc_b)
    else:
        out_shape = (jax.ShapeDtypeStruct((T, B, H), jnp.bfloat16),
                     jax.ShapeDtypeStruct((T, B, H), jnp.bfloat16))
        out_specs = (pl.BlockSpec((1, Bt, H), lambda b, t: (t, b, 0)),
                     pl.BlockSpec((1, Bt, H), lambda b, t: (T - 1 - t, b, 0)))
        args = (gin_f, gin_b, lens, w_hh_f, w_hh_b)

    return pl.pallas_call(
        _make_recurrence_kernel(last, T),
        out_shape=out_shape,
        grid=(nb, T),
        in_specs=in_specs,
        out_specs=out_specs,
        scratch_shapes=[pltpu.VMEM((2 * Bt, H), jnp.float32)] * 2,   # h state, c state
        compiler_params=pltpu.CompilerParams(
            dimension_semantics=("parallel", "arbitrary"),
            vmem_limit_bytes=_VMEM_LIMIT),
    )(*args)


# ---------------------------------------------------------------------------
# Parameters (deterministic synthetic init; shapes match the nn.Module).
# Gate columns per direction are stored [i, f, o, g] (PyTorch uses [i, f, g, o];
# importing real weights would require a column permutation).
# ---------------------------------------------------------------------------
def init_params(key, vocab_size, emb_dim, hidden_dim, output_dim, n_layers):
    H = hidden_dim
    E_pad = _round_up(emb_dim, 128)               # pad E=100 -> 128 (lane-dense layer 0)
    keys = jax.random.split(key, 2 + n_layers)

    emb = jax.random.normal(keys[0], (vocab_size, emb_dim), jnp.float32)
    emb = jnp.pad(emb, ((0, 0), (0, E_pad - emb_dim)))        # zero-padded columns
    params = {"embedding": emb}

    s = 1.0 / jnp.sqrt(H)

    def u(k, shape, scale):
        return jax.random.uniform(k, shape, jnp.float32, -scale, scale)

    layers = []
    for l in range(n_layers):
        din = emb_dim if l == 0 else 2 * H
        kk = jax.random.split(keys[1 + l], 8)
        wif = u(kk[0], (din, 4 * H), s)           # forward  W_ih^T
        whf = u(kk[1], (H, 4 * H), s)             # forward  W_hh^T
        wib = u(kk[2], (din, 4 * H), s)           # backward W_ih^T
        whb = u(kk[3], (H, 4 * H), s)             # backward W_hh^T
        bf = u(kk[4], (1, 4 * H), s) + u(kk[5], (1, 4 * H), s)    # b_ih + b_hh (fwd)
        bb = u(kk[6], (1, 4 * H), s) + u(kk[7], (1, 4 * H), s)    # b_ih + b_hh (bwd)

        w_in = jnp.concatenate([wif, wib], axis=1)                # (din, 8H)
        if l == 0:
            w_in = jnp.pad(w_in, ((0, E_pad - din), (0, 0)))      # zero rows for padded E
            layer = dict(w_in=w_in.astype(jnp.bfloat16))
        else:
            layer = dict(w_in_f=w_in[:H].astype(jnp.bfloat16),    # multiplies fwd hidden
                         w_in_b=w_in[H:].astype(jnp.bfloat16))    # multiplies bwd hidden
        layer.update(b_in=jnp.concatenate([bf, bb], axis=1),      # (1, 8H) f32
                     w_hh_f=whf.astype(jnp.bfloat16),
                     w_hh_b=whb.astype(jnp.bfloat16))
        layers.append(layer)
    params["lstm"] = layers

    kf = jax.random.split(keys[1 + n_layers], 2)
    sf = 1.0 / jnp.sqrt(2 * H)
    fc_w = u(kf[0], (2 * H, output_dim), sf)
    params["fc_w_f"] = fc_w[:H].astype(jnp.bfloat16)              # split-K fused epilogue
    params["fc_w_b"] = fc_w[H:].astype(jnp.bfloat16)
    params["fc_b"] = u(kf[1], (1, output_dim), sf)
    return params


# ---------------------------------------------------------------------------
# Full forward pass (glue in plain JAX, hot paths in Pallas).
# ---------------------------------------------------------------------------
def classifier_forward(params, text, text_lengths):
    B, T = text.shape
    B_pad = _round_up(B, 8)                          # sublane-dense batch
    if B_pad != B:
        text = jnp.pad(text, ((0, B_pad - B), (0, 0)))
        text_lengths = jnp.pad(text_lengths, (0, B_pad - B))   # len 0 -> state stays zero
    lens = text_lengths.astype(jnp.int32).reshape(B_pad, 1)

    # Embedding gather directly into time-major layout (no separate transpose pass).
    # TODO(synk): fully fuse the gather into the layer-0 projection via scalar prefetch.
    x_tm = jnp.take(params["embedding"], text.T, axis=0)          # (T, B_pad, E_pad) f32
    E_pad = x_tm.shape[-1]

    layers = params["lstm"]
    n_layers = len(layers)
    H = layers[0]["w_hh_f"].shape[0]

    yf = yb = None
    out = None
    for li, layer in enumerate(layers):
        # 1) hoisted bf16 input projection for all timesteps / both directions
        if li == 0:
            gf2d, gb2d = input_projection(x_tm.reshape(T * B_pad, E_pad),
                                          layer["w_in"], layer["b_in"])
        else:
            gf2d, gb2d = input_projection_dual(yf.reshape(T * B_pad, H),
                                               yb.reshape(T * B_pad, H),
                                               layer["w_in_f"], layer["w_in_b"],
                                               layer["b_in"])
        gin_f = gf2d.reshape(T, B_pad, 4 * H)
        gin_b = gb2d.reshape(T, B_pad, 4 * H)

        # 2) the serial recurrence (last layer fuses fc + sigmoid on the final hidden)
        if li == n_layers - 1:
            out = lstm_bidir_recurrence(gin_f, gin_b, lens,
                                        layer["w_hh_f"], layer["w_hh_b"],
                                        params["fc_w_f"], params["fc_w_b"],
                                        params["fc_b"])
        else:
            yf, yb = lstm_bidir_recurrence(gin_f, gin_b, lens,
                                           layer["w_hh_f"], layer["w_hh_b"])
        # TODO(synk): nn.LSTM inter-layer dropout (p=0.2) is train-only; eval forward omits it.

    return out[:B]                                    # (B, output_dim) sigmoid probabilities


if __name__ == "__main__":
    vocab_size, hidden_dim, output_dim, n_layers = 50, 32, 1, 2
    B, T = 4, 8

    key = jax.random.PRNGKey(0)
    pkey, tkey = jax.random.split(key)
    params = init_params(pkey, vocab_size, embedding_dim, hidden_dim, output_dim, n_layers)

    text = jax.random.randint(tkey, (B, T), 0, vocab_size, dtype=jnp.int32)
    # sorted descending, as pack_padded_sequence(enforce_sorted=True) requires
    text_lengths = jnp.array([8, 6, 5, 3], dtype=jnp.int32)

    out = jax.jit(classifier_forward)(params, text, text_lengths)
    jax.block_until_ready(out)
    assert out.shape == (B, output_dim)
    assert bool(jnp.all((out >= 0.0) & (out <= 1.0)))
    print("KERNEL_OK")
</pallas_src>

<mosaic_0001>
module attributes {stable_mosaic.version = 11 : i64} {
  func.func @_proj2_kernel(%arg0: i32, %arg1: memref<64x32xbf16, #tpu.memory_space<vmem>>, %arg2: memref<64x32xbf16, #tpu.memory_space<vmem>>, %arg3: memref<32x256xbf16, #tpu.memory_space<vmem>>, %arg4: memref<32x256xbf16, #tpu.memory_space<vmem>>, %arg5: memref<1x256xf32, #tpu.memory_space<vmem>>, %arg6: memref<64x128xbf16, #tpu.memory_space<vmem>>, %arg7: memref<64x128xbf16, #tpu.memory_space<vmem>>) attributes {dimension_semantics = [#tpu.dimension_semantics<parallel>], iteration_bounds = array<i64: 1>, scalar_prefetch = 0 : i64, scratch_operands = 0 : i64, tpu.core_type = #tpu.core_type<tc>, window_params = [{transform_indices = @transform_0, window_bounds = array<i64: 64, 32>}, {transform_indices = @transform_1, window_bounds = array<i64: 64, 32>}, {pipeline_mode = #tpu.pipeline_mode<synchronous>, transform_indices = @transform_2, window_bounds = array<i64: 32, 256>}, {pipeline_mode = #tpu.pipeline_mode<synchronous>, transform_indices = @transform_3, window_bounds = array<i64: 32, 256>}, {pipeline_mode = #tpu.pipeline_mode<synchronous>, transform_indices = @transform_4, window_bounds = array<i64: 1, 256>}, {transform_indices = @transform_5, window_bounds = array<i64: 64, 128>}, {transform_indices = @transform_6, window_bounds = array<i64: 64, 128>}]} {
    %c0 = arith.constant 0 : index
    %c0_0 = arith.constant 0 : index
    %0 = vector.load %arg1[%c0, %c0_0] : memref<64x32xbf16, #tpu.memory_space<vmem>>, vector<64x32xbf16>
    %c0_1 = arith.constant 0 : index
    %c0_2 = arith.constant 0 : index
    %1 = vector.load %arg3[%c0_1, %c0_2] : memref<32x256xbf16, #tpu.memory_space<vmem>>, vector<32x256xbf16>
    %cst = arith.constant dense<0.000000e+00> : vector<64x256xf32>
    %2 = tpu.matmul %0, %1, %cst {dimension_numbers = #tpu.dot_dimension_numbers<[1], [0], [0], [1], [0, 0, 1, 1], [], []>} : vector<64x32xbf16>, vector<32x256xbf16>, vector<64x256xf32> -> vector<64x256xf32>
    %c0_3 = arith.constant 0 : index
    %c0_4 = arith.constant 0 : index
    %3 = vector.load %arg2[%c0_3, %c0_4] : memref<64x32xbf16, #tpu.memory_space<vmem>>, vector<64x32xbf16>
    %c0_5 = arith.constant 0 : index
    %c0_6 = arith.constant 0 : index
    %4 = vector.load %arg4[%c0_5, %c0_6] : memref<32x256xbf16, #tpu.memory_space<vmem>>, vector<32x256xbf16>
    %cst_7 = arith.constant dense<0.000000e+00> : vector<64x256xf32>
    %5 = tpu.matmul %3, %4, %cst_7 {dimension_numbers = #tpu.dot_dimension_numbers<[1], [0], [0], [1], [0, 0, 1, 1], [], []>} : vector<64x32xbf16>, vector<32x256xbf16>, vector<64x256xf32> -> vector<64x256xf32>
    %6 = arith.addf %2, %5 : vector<64x256xf32>
    %c0_8 = arith.constant 0 : index
    %c0_9 = arith.constant 0 : index
    %7 = vector.load %arg5[%c0_8, %c0_9] : memref<1x256xf32, #tpu.memory_space<vmem>>, vector<1x256xf32>
    %8 = vector.broadcast %7 : vector<1x256xf32> to vector<64x256xf32>
    %9 = arith.addf %6, %8 : vector<64x256xf32>
    %10 = vector.extract_strided_slice %9 {offsets = [0, 0], sizes = [64, 128], strides = [1, 1]} : vector<64x256xf32> to vector<64x128xf32>
    %11 = arith.truncf %10 : vector<64x128xf32> to vector<64x128xbf16>
    %c0_10 = arith.constant 0 : index
    %c0_11 = arith.constant 0 : index
    %12 = vector.load %arg6[%c0_10, %c0_11] : memref<64x128xbf16, #tpu.memory_space<vmem>>, vector<64x128xbf16>
    tpu.vector_store %arg6[%c0_10, %c0_11], %11 {strides = array<i32>} : memref<64x128xbf16, #tpu.memory_space<vmem>>, vector<64x128xbf16>,
    %13 = vector.extract_strided_slice %9 {offsets = [0, 128], sizes = [64, 128], strides = [1, 1]} : vector<64x256xf32> to vector<64x128xf32>
    %14 = arith.truncf %13 : vector<64x128xf32> to vector<64x128xbf16>
    %c0_12 = arith.constant 0 : index
    %c0_13 = arith.constant 0 : index
    %15 = vector.load %arg7[%c0_12, %c0_13] : memref<64x128xbf16, #tpu.memory_space<vmem>>, vector<64x128xbf16>
    tpu.vector_store %arg7[%c0_12, %c0_13], %14 {strides = array<i32>} : memref<64x128xbf16, #tpu.memory_space<vmem>>, vector<64x128xbf16>,
    return
  }
  func.func @transform_0(%arg0: i32) -> (i32, i32) {
    %c0_i32 = arith.constant 0 : i32
    %c0_i32_0 = arith.constant 0 : i32
    return %arg0, %c0_i32 : i32, i32
  }
  func.func @transform_1(%arg0: i32) -> (i32, i32) {
    %c0_i32 = arith.constant 0 : i32
    %c0_i32_0 = arith.constant 0 : i32
    return %arg0, %c0_i32 : i32, i32
  }
  func.func @transform_2(%arg0: i32) -> (i32, i32) {
    %c0_i32 = arith.constant 0 : i32
    %c0_i32_0 = arith.constant 0 : i32
    %c0_i32_1 = arith.constant 0 : i32
    return %c0_i32, %c0_i32_0 : i32, i32
  }
  func.func @transform_3(%arg0: i32) -> (i32, i32) {
    %c0_i32 = arith.constant 0 : i32
    %c0_i32_0 = arith.constant 0 : i32
    %c0_i32_1 = arith.constant 0 : i32
    return %c0_i32, %c0_i32_0 : i32, i32
  }
  func.func @transform_4(%arg0: i32) -> (i32, i32) {
    %c0_i32 = arith.constant 0 : i32
    %c0_i32_0 = arith.constant 0 : i32
    %c0_i32_1 = arith.constant 0 : i32
    return %c0_i32, %c0_i32_0 : i32, i32
  }
  func.func @transform_5(%arg0: i32) -> (i32, i32) {
    %c0_i32 = arith.constant 0 : i32
    %c0_i32_0 = arith.constant 0 : i32
    return %arg0, %c0_i32 : i32, i32
  }
  func.func @transform_6(%arg0: i32) -> (i32, i32) {
    %c0_i32 = arith.constant 0 : i32
    %c0_i32_0 = arith.constant 0 : i32
    return %arg0, %c0_i32 : i32, i32
  }
}

module attributes {stable_mosaic.version = 11 : i64} {
  func.func @kernel(%arg0: i32, %arg1: i32, %arg2: memref<1x8x128xbf16, #tpu.memory_space<vmem>>, %arg3: memref<1x8x128xbf16, #tpu.memory_space<vmem>>, %arg4: memref<8x1xi32, #tpu.memory_space<vmem>>, %arg5: memref<32x128xbf16, #tpu.memory_space<vmem>>, %arg6: memref<32x128xbf16, #tpu.memory_space<vmem>>, %arg7: memref<1x8x32xbf16, #tpu.memory_space<vmem>>, %arg8: memref<1x8x32xbf16, #tpu.memory_space<vmem>>, %arg9: memref<16x32xf32, #tpu.memory_space<vmem>>, %arg10: memref<16x32xf32, #tpu.memory_space<vmem>>) attributes {dimension_semantics = [#tpu.dimension_semantics<parallel>, #tpu.dimension_semantics<arbitrary>], iteration_bounds = array<i64: 1, 8>, scalar_prefetch = 0 : i64, scratch_operands = 2 : i64, tpu.core_type = #tpu.core_type<tc>, window_params = [{transform_indices = @transform_0, window_bounds = array<i64: 1, 8, 128>}, {transform_indices = @transform_1, window_bounds = array<i64: 1, 8, 128>}, {transform_indices = @transform_2, window_bounds = array<i64: 8, 1>}, {pipeline_mode = #tpu.pipeline_mode<synchronous>, transform_indices = @transform_3, window_bounds = array<i64: 32, 128>}, {pipeline_mode = #tpu.pipeline_mode<synchronous>, transform_indices = @transform_4, window_bounds = array<i64: 32, 128>}, {transform_indices = @transform_5, window_bounds = array<i64: 1, 8, 32>}, {transform_indices = @transform_6, window_bounds = array<i64: 1, 8, 32>}]} {
    %c0_i32 = arith.constant 0 : i32
    %0 = arith.cmpi eq, %arg1, %c0_i32 : i32
    %1 = arith.extui %0 : i1 to i32
    %c0_i32_0 = arith.constant 0 : i32
    %2 = arith.cmpi ne, %1, %c0_i32_0 : i32
    scf.if %2 {
      %cst_34 = arith.constant 0.000000e+00 : f32
      %77 = vector.broadcast %cst_34 : f32 to vector<16x32xf32>
      %c0_35 = arith.constant 0 : index
      %c0_36 = arith.constant 0 : index
      %78 = vector.load %arg9[%c0_35, %c0_36] : memref<16x32xf32, #tpu.memory_space<vmem>>, vector<16x32xf32>
      tpu.vector_store %arg9[%c0_35, %c0_36], %77 {strides = array<i32>} : memref<16x32xf32, #tpu.memory_space<vmem>>, vector<16x32xf32>,
      %cst_37 = arith.constant 0.000000e+00 : f32
      %79 = vector.broadcast %cst_37 : f32 to vector<16x32xf32>
      %c0_38 = arith.constant 0 : index
      %c0_39 = arith.constant 0 : index
      %80 = vector.load %arg10[%c0_38, %c0_39] : memref<16x32xf32, #tpu.memory_space<vmem>>, vector<16x32xf32>
      tpu.vector_store %arg10[%c0_38, %c0_39], %79 {strides = array<i32>} : memref<16x32xf32, #tpu.memory_space<vmem>>, vector<16x32xf32>,
    } else {
    }
    %c0 = arith.constant 0 : index
    %c0_1 = arith.constant 0 : index
    %3 = vector.load %arg4[%c0, %c0_1] : memref<8x1xi32, #tpu.memory_space<vmem>>, vector<8x1xi32>
    %4 = tpu.iota {dimensions = array<i32: 0>} : vector<16x1xi32>
    %c8_i32 = arith.constant 8 : i32
    %5 = vector.broadcast %c8_i32 : i32 to vector<16x1xi32>
    %6 = arith.cmpi slt, %4, %5 : vector<16x1xi32>
    %c7_i32 = arith.constant 7 : i32
    %7 = arith.subi %c7_i32, %arg1 : i32
    %8 = vector.broadcast %arg1 : i32 to vector<16x1xi32>
    %9 = vector.broadcast %7 : i32 to vector<16x1xi32>
    %10 = arith.select %6, %8, %9 : vector<16x1xi1>, vector<16x1xi32>
    %11 = tpu.concatenate %3, %3 in 0 : vector<8x1xi32>, vector<8x1xi32> -> vector<16x1xi32>
    %12 = arith.cmpi slt, %10, %11 : vector<16x1xi32>
    %13 = vector.extract_strided_slice %12 {offsets = [0, 0], sizes = [8, 1], strides = [1, 1]} : vector<16x1xi1> to vector<8x1xi1>
    %14 = vector.extract_strided_slice %12 {offsets = [8, 0], sizes = [8, 1], strides = [1, 1]} : vector<16x1xi1> to vector<8x1xi1>
    %c0_2 = arith.constant 0 : index
    %c0_3 = arith.constant 0 : index
    %15 = vector.load %arg9[%c0_2, %c0_3] : memref<16x32xf32, #tpu.memory_space<vmem>>, vector<16x32xf32>
    %16 = arith.truncf %15 : vector<16x32xf32> to vector<16x32xbf16>
    %17 = vector.extract_strided_slice %16 {offsets = [0, 0], sizes = [8, 32], strides = [1, 1]} : vector<16x32xbf16> to vector<8x32xbf16>
    %c0_4 = arith.constant 0 : index
    %c0_5 = arith.constant 0 : index
    %18 = vector.load %arg5[%c0_4, %c0_5] : memref<32x128xbf16, #tpu.memory_space<vmem>>, vector<32x128xbf16>
    %cst = arith.constant dense<0.000000e+00> : vector<8x128xf32>
    %19 = tpu.matmul %17, %18, %cst {dimension_numbers = #tpu.dot_dimension_numbers<[1], [0], [0], [1], [0, 0, 1, 1], [], []>} : vector<8x32xbf16>, vector<32x128xbf16>, vector<8x128xf32> -> vector<8x128xf32>
    %20 = vector.extract_strided_slice %16 {offsets = [8, 0], sizes = [8, 32], strides = [1, 1]} : vector<16x32xbf16> to vector<8x32xbf16>
    %c0_6 = arith.constant 0 : index
    %c0_7 = arith.constant 0 : index
    %21 = vector.load %arg6[%c0_6, %c0_7] : memref<32x128xbf16, #tpu.memory_space<vmem>>, vector<32x128xbf16>
    %cst_8 = arith.constant dense<0.000000e+00> : vector<8x128xf32>
    %22 = tpu.matmul %20, %21, %cst_8 {dimension_numbers = #tpu.dot_dimension_numbers<[1], [0], [0], [1], [0, 0, 1, 1], [], []>} : vector<8x32xbf16>, vector<32x128xbf16>, vector<8x128xf32> -> vector<8x128xf32>
    %c0_9 = arith.constant 0 : index
    %c0_10 = arith.constant 0 : index
    %c0_11 = arith.constant 0 : index
    %23 = vector.load %arg2[%c0_9, %c0_10, %c0_11] : memref<1x8x128xbf16, #tpu.memory_space<vmem>>, vector<1x8x128xbf16>
    %24 = vector.shape_cast %23 : vector<1x8x128xbf16> to vector<8x128xbf16>
    %25 = arith.extf %24 : vector<8x128xbf16> to vector<8x128xf32>
    %26 = arith.addf %25, %19 : vector<8x128xf32>
    %c0_12 = arith.constant 0 : index
    %c0_13 = arith.constant 0 : index
    %c0_14 = arith.constant 0 : index
    %27 = vector.load %arg3[%c0_12, %c0_13, %c0_14] : memref<1x8x128xbf16, #tpu.memory_space<vmem>>, vector<1x8x128xbf16>
    %28 = vector.shape_cast %27 : vector<1x8x128xbf16> to vector<8x128xbf16>
    %29 = arith.extf %28 : vector<8x128xbf16> to vector<8x128xf32>
    %30 = arith.addf %29, %22 : vector<8x128xf32>
    %31 = tpu.concatenate %26, %30 in 0 : vector<8x128xf32>, vector<8x128xf32> -> vector<16x128xf32>
    %32 = vector.extract_strided_slice %31 {offsets = [0, 0], sizes = [16, 96], strides = [1, 1]} : vector<16x128xf32> to vector<16x96xf32>
    %33 = arith.negf %32 : vector<16x96xf32>
    %34 = math.exp %33 : vector<16x96xf32>
    %cst_15 = arith.constant 1.000000e+00 : f32
    %35 = vector.broadcast %cst_15 : f32 to vector<16x96xf32>
    %36 = arith.addf %35, %34 : vector<16x96xf32>
    %37 = arith.divf %35, %36 : vector<16x96xf32>
    %38 = vector.extract_strided_slice %31 {offsets = [0, 96], sizes = [16, 32], strides = [1, 1]} : vector<16x128xf32> to vector<16x32xf32>
    %39 = math.tanh %38 : vector<16x32xf32>
    %40 = vector.extract_strided_slice %37 {offsets = [0, 0], sizes = [16, 32], strides = [1, 1]} : vector<16x96xf32> to vector<16x32xf32>
    %41 = vector.extract_strided_slice %37 {offsets = [0, 32], sizes = [16, 32], strides = [1, 1]} : vector<16x96xf32> to vector<16x32xf32>
    %42 = vector.extract_strided_slice %37 {offsets = [0, 64], sizes = [16, 32], strides = [1, 1]} : vector<16x96xf32> to vector<16x32xf32>
    %c0_16 = arith.constant 0 : index
    %c0_17 = arith.constant 0 : index
    %43 = vector.load %arg10[%c0_16, %c0_17] : memref<16x32xf32, #tpu.memory_space<vmem>>, vector<16x32xf32>
    %44 = arith.mulf %41, %43 : vector<16x32xf32>
    %45 = arith.mulf %40, %39 : vector<16x32xf32>
    %46 = arith.addf %44, %45 : vector<16x32xf32>
    %47 = math.tanh %46 : vector<16x32xf32>
    %48 = arith.mulf %42, %47 : vector<16x32xf32>
    %c0_18 = arith.constant 0 : index
    %c0_19 = arith.constant 0 : index
    %49 = vector.load %arg9[%c0_18, %c0_19] : memref<16x32xf32, #tpu.memory_space<vmem>>, vector<16x32xf32>
    %50 = vector.shape_cast %12 : vector<16x1xi1> to vector<16x1xi1>
    %51 = vector.broadcast %50 : vector<16x1xi1> to vector<16x32xi1>
    %52 = arith.select %51, %48, %49 : vector<16x32xi1>, vector<16x32xf32>
    %c0_20 = arith.constant 0 : index
    %c0_21 = arith.constant 0 : index
    %53 = vector.load %arg9[%c0_20, %c0_21] : memref<16x32xf32, #tpu.memory_space<vmem>>, vector<16x32xf32>
    tpu.vector_store %arg9[%c0_20, %c0_21], %52 {strides = array<i32>} : memref<16x32xf32, #tpu.memory_space<vmem>>, vector<16x32xf32>,
    %c0_22 = arith.constant 0 : index
    %c0_23 = arith.constant 0 : index
    %54 = vector.load %arg10[%c0_22, %c0_23] : memref<16x32xf32, #tpu.memory_space<vmem>>, vector<16x32xf32>
    %55 = vector.shape_cast %12 : vector<16x1xi1> to vector<16x1xi1>
    %56 = vector.broadcast %55 : vector<16x1xi1> to vector<16x32xi1>
    %57 = arith.select %56, %46, %54 : vector<16x32xi1>, vector<16x32xf32>
    %c0_24 = arith.constant 0 : index
    %c0_25 = arith.constant 0 : index
    %58 = vector.load %arg10[%c0_24, %c0_25] : memref<16x32xf32, #tpu.memory_space<vmem>>, vector<16x32xf32>
    tpu.vector_store %arg10[%c0_24, %c0_25], %57 {strides = array<i32>} : memref<16x32xf32, #tpu.memory_space<vmem>>, vector<16x32xf32>,
    %59 = vector.extract_strided_slice %48 {offsets = [0, 0], sizes = [8, 32], strides = [1, 1]} : vector<16x32xf32> to vector<8x32xf32>
    %cst_26 = arith.constant 0.000000e+00 : f32
    %60 = vector.shape_cast %13 : vector<8x1xi1> to vector<8x1xi1>
    %61 = vector.broadcast %60 : vector<8x1xi1> to vector<8x32xi1>
    %62 = vector.broadcast %cst_26 : f32 to vector<8x32xf32>
    %63 = arith.select %61, %59, %62 : vector<8x32xi1>, vector<8x32xf32>
    %64 = arith.truncf %63 : vector<8x32xf32> to vector<8x32xbf16>
    %c0_27 = arith.constant 0 : index
    %c0_28 = arith.constant 0 : index
    %c0_29 = arith.constant 0 : index
    %65 = vector.load %arg7[%c0_27, %c0_28, %c0_29] : memref<1x8x32xbf16, #tpu.memory_space<vmem>>, vector<1x8x32xbf16>
    %66 = vector.shape_cast %65 : vector<1x8x32xbf16> to vector<8x32xbf16>
    %67 = vector.shape_cast %64 : vector<8x32xbf16> to vector<1x8x32xbf16>
    tpu.vector_store %arg7[%c0_27, %c0_28, %c0_29], %67 {strides = array<i32>} : memref<1x8x32xbf16, #tpu.memory_space<vmem>>, vector<1x8x32xbf16>,
    %68 = vector.extract_strided_slice %48 {offsets = [8, 0], sizes = [8, 32], strides = [1, 1]} : vector<16x32xf32> to vector<8x32xf32>
    %cst_30 = arith.constant 0.000000e+00 : f32
    %69 = vector.shape_cast %14 : vector<8x1xi1> to vector<8x1xi1>
    %70 = vector.broadcast %69 : vector<8x1xi1> to vector<8x32xi1>
    %71 = vector.broadcast %cst_30 : f32 to vector<8x32xf32>
    %72 = arith.select %70, %68, %71 : vector<8x32xi1>, vector<8x32xf32>
    %73 = arith.truncf %72 : vector<8x32xf32> to vector<8x32xbf16>
    %c0_31 = arith.constant 0 : index
    %c0_32 = arith.constant 0 : index
    %c0_33 = arith.constant 0 : index
    %74 = vector.load %arg8[%c0_31, %c0_32, %c0_33] : memref<1x8x32xbf16, #tpu.memory_space<vmem>>, vector<1x8x32xbf16>
    %75 = vector.shape_cast %74 : vector<1x8x32xbf16> to vector<8x32xbf16>
    %76 = vector.shape_cast %73 : vector<8x32xbf16> to vector<1x8x32xbf16>
    tpu.vector_store %arg8[%c0_31, %c0_32, %c0_33], %76 {strides = array<i32>} : memref<1x8x32xbf16, #tpu.memory_space<vmem>>, vector<1x8x32xbf16>,
    return
  }
  func.func @transform_0(%arg0: i32, %arg1: i32) -> (i32, i32, i32) {
    %c0_i32 = arith.constant 0 : i32
    %c0_i32_0 = arith.constant 0 : i32
    return %arg1, %arg0, %c0_i32 : i32, i32, i32
  }
  func.func @transform_1(%arg0: i32, %arg1: i32) -> (i32, i32, i32) {
    %c7_i32 = arith.constant 7 : i32
    %0 = arith.subi %c7_i32, %arg1 : i32
    %c0_i32 = arith.constant 0 : i32
    %c0_i32_0 = arith.constant 0 : i32
    return %0, %arg0, %c0_i32 : i32, i32, i32
  }
  func.func @transform_2(%arg0: i32, %arg1: i32) -> (i32, i32) {
    %c0_i32 = arith.constant 0 : i32
    %c0_i32_0 = arith.constant 0 : i32
    return %arg0, %c0_i32 : i32, i32
  }
  func.func @transform_3(%arg0: i32, %arg1: i32) -> (i32, i32) {
    %c0_i32 = arith.constant 0 : i32
    %c0_i32_0 = arith.constant 0 : i32
    %c0_i32_1 = arith.constant 0 : i32
    return %c0_i32, %c0_i32_0 : i32, i32
  }
  func.func @transform_4(%arg0: i32, %arg1: i32) -> (i32, i32) {
    %c0_i32 = arith.constant 0 : i32
    %c0_i32_0 = arith.constant 0 : i32
    %c0_i32_1 = arith.constant 0 : i32
    return %c0_i32, %c0_i32_0 : i32, i32
  }
  func.func @transform_5(%arg0: i32, %arg1: i32) -> (i32, i32, i32) {
    %c0_i32 = arith.constant 0 : i32
    %c0_i32_0 = arith.constant 0 : i32
    return %arg1, %arg0, %c0_i32 : i32, i32, i32
  }
  func.func @transform_6(%arg0: i32, %arg1: i32) -> (i32, i32, i32) {
    %c7_i32 = arith.constant 7 : i32
    %0 = arith.subi %c7_i32, %arg1 : i32
    %c0_i32 = arith.constant 0 : i32
    %c0_i32_0 = arith.constant 0 : i32
    return %0, %arg0, %c0_i32 : i32, i32, i32
  }
}

module attributes {stable_mosaic.version = 11 : i64} {
  func.func @_proj1_kernel(%arg0: i32, %arg1: memref<64x128xf32, #tpu.memory_space<vmem>>, %arg2: memref<128x256xbf16, #tpu.memory_space<vmem>>, %arg3: memref<1x256xf32, #tpu.memory_space<vmem>>, %arg4: memref<64x128xbf16, #tpu.memory_space<vmem>>, %arg5: memref<64x128xbf16, #tpu.memory_space<vmem>>) attributes {dimension_semantics = [#tpu.dimension_semantics<parallel>], iteration_bounds = array<i64: 1>, scalar_prefetch = 0 : i64, scratch_operands = 0 : i64, tpu.core_type = #tpu.core_type<tc>, window_params = [{transform_indices = @transform_0, window_bounds = array<i64: 64, 128>}, {pipeline_mode = #tpu.pipeline_mode<synchronous>, transform_indices = @transform_1, window_bounds = array<i64: 128, 256>}, {pipeline_mode = #tpu.pipeline_mode<synchronous>, transform_indices = @transform_2, window_bounds = array<i64: 1, 256>}, {transform_indices = @transform_3, window_bounds = array<i64: 64, 128>}, {transform_indices = @transform_4, window_bounds = array<i64: 64, 128>}]} {
    %c0 = arith.constant 0 : index
    %c0_0 = arith.constant 0 : index
    %0 = vector.load %arg1[%c0, %c0_0] : memref<64x128xf32, #tpu.memory_space<vmem>>, vector<64x128xf32>
    %1 = arith.truncf %0 : vector<64x128xf32> to vector<64x128xbf16>
    %c0_1 = arith.constant 0 : index
    %c0_2 = arith.constant 0 : index
    %2 = vector.load %arg2[%c0_1, %c0_2] : memref<128x256xbf16, #tpu.memory_space<vmem>>, vector<128x256xbf16>
    %cst = arith.constant dense<0.000000e+00> : vector<64x256xf32>
    %3 = tpu.matmul %1, %2, %cst {dimension_numbers = #tpu.dot_dimension_numbers<[1], [0], [0], [1], [0, 0, 1, 1], [], []>} : vector<64x128xbf16>, vector<128x256xbf16>, vector<64x256xf32> -> vector<64x256xf32>
    %c0_3 = arith.constant 0 : index
    %c0_4 = arith.constant 0 : index
    %4 = vector.load %arg3[%c0_3, %c0_4] : memref<1x256xf32, #tpu.memory_space<vmem>>, vector<1x256xf32>
    %5 = vector.broadcast %4 : vector<1x256xf32> to vector<64x256xf32>
    %6 = arith.addf %3, %5 : vector<64x256xf32>
    %7 = vector.extract_strided_slice %6 {offsets = [0, 0], sizes = [64, 128], strides = [1, 1]} : vector<64x256xf32> to vector<64x128xf32>
    %8 = arith.truncf %7 : vector<64x128xf32> to vector<64x128xbf16>
    %c0_5 = arith.constant 0 : index
    %c0_6 = arith.constant 0 : index
    %9 = vector.load %arg4[%c0_5, %c0_6] : memref<64x128xbf16, #tpu.memory_space<vmem>>, vector<64x128xbf16>
    tpu.vector_store %arg4[%c0_5, %c0_6], %8 {strides = array<i32>} : memref<64x128xbf16, #tpu.memory_space<vmem>>, vector<64x128xbf16>,
    %10 = vector.extract_strided_slice %6 {offsets = [0, 128], sizes = [64, 128], strides = [1, 1]} : vector<64x256xf32> to vector<64x128xf32>
    %11 = arith.truncf %10 : vector<64x128xf32> to vector<64x128xbf16>
    %c0_7 = arith.constant 0 : index
    %c0_8 = arith.constant 0 : index
    %12 = vector.load %arg5[%c0_7, %c0_8] : memref<64x128xbf16, #tpu.memory_space<vmem>>, vector<64x128xbf16>
    tpu.vector_store %arg5[%c0_7, %c0_8], %11 {strides = array<i32>} : memref<64x128xbf16, #tpu.memory_space<vmem>>, vector<64x128xbf16>,
    return
  }
  func.func @transform_0(%arg0: i32) -> (i32, i32) {
    %c0_i32 = arith.constant 0 : i32
    %c0_i32_0 = arith.constant 0 : i32
    return %arg0, %c0_i32 : i32, i32
  }
  func.func @transform_1(%arg0: i32) -> (i32, i32) {
    %c0_i32 = arith.constant 0 : i32
    %c0_i32_0 = arith.constant 0 : i32
    %c0_i32_1 = arith.constant 0 : i32
    return %c0_i32, %c0_i32_0 : i32, i32
  }
  func.func @transform_2(%arg0: i32) -> (i32, i32) {
    %c0_i32 = arith.constant 0 : i32
    %c0_i32_0 = arith.constant 0 : i32
    %c0_i32_1 = arith.constant 0 : i32
    return %c0_i32, %c0_i32_0 : i32, i32
  }
  func.func @transform_3(%arg0: i32) -> (i32, i32) {
    %c0_i32 = arith.constant 0 : i32
    %c0_i32_0 = arith.constant 0 : i32
    return %arg0, %c0_i32 : i32, i32
  }
  func.func @transform_4(%arg0: i32) -> (i32, i32) {
    %c0_i32 = arith.constant 0 : i32
    %c0_i32_0 = arith.constant 0 : i32
    return %arg0, %c0_i32 : i32, i32
  }
}

module attributes {stable_mosaic.version = 11 : i64} {
  func.func @kernel(%arg0: i32, %arg1: i32, %arg2: memref<1x8x128xbf16, #tpu.memory_space<vmem>>, %arg3: memref<1x8x128xbf16, #tpu.memory_space<vmem>>, %arg4: memref<8x1xi32, #tpu.memory_space<vmem>>, %arg5: memref<32x128xbf16, #tpu.memory_space<vmem>>, %arg6: memref<32x128xbf16, #tpu.memory_space<vmem>>, %arg7: memref<32x1xbf16, #tpu.memory_space<vmem>>, %arg8: memref<32x1xbf16, #tpu.memory_space<vmem>>, %arg9: memref<1x1xf32, #tpu.memory_space<vmem>>, %arg10: memref<8x1xf32, #tpu.memory_space<vmem>>, %arg11: memref<16x32xf32, #tpu.memory_space<vmem>>, %arg12: memref<16x32xf32, #tpu.memory_space<vmem>>) attributes {dimension_semantics = [#tpu.dimension_semantics<parallel>, #tpu.dimension_semantics<arbitrary>], iteration_bounds = array<i64: 1, 8>, scalar_prefetch = 0 : i64, scratch_operands = 2 : i64, tpu.core_type = #tpu.core_type<tc>, window_params = [{transform_indices = @transform_0, window_bounds = array<i64: 1, 8, 128>}, {transform_indices = @transform_1, window_bounds = array<i64: 1, 8, 128>}, {transform_indices = @transform_2, window_bounds = array<i64: 8, 1>}, {pipeline_mode = #tpu.pipeline_mode<synchronous>, transform_indices = @transform_3, window_bounds = array<i64: 32, 128>}, {pipeline_mode = #tpu.pipeline_mode<synchronous>, transform_indices = @transform_4, window_bounds = array<i64: 32, 128>}, {pipeline_mode = #tpu.pipeline_mode<synchronous>, transform_indices = @transform_5, window_bounds = array<i64: 32, 1>}, {pipeline_mode = #tpu.pipeline_mode<synchronous>, transform_indices = @transform_6, window_bounds = array<i64: 32, 1>}, {pipeline_mode = #tpu.pipeline_mode<synchronous>, transform_indices = @transform_7, window_bounds = array<i64: 1, 1>}, {transform_indices = @transform_8, window_bounds = array<i64: 8, 1>}]} {
    %c0_i32 = arith.constant 0 : i32
    %0 = arith.cmpi eq, %arg1, %c0_i32 : i32
    %1 = arith.extui %0 : i1 to i32
    %c0_i32_0 = arith.constant 0 : i32
    %2 = arith.cmpi ne, %1, %c0_i32_0 : i32
    scf.if %2 {
      %cst_28 = arith.constant 0.000000e+00 : f32
      %60 = vector.broadcast %cst_28 : f32 to vector<16x32xf32>
      %c0_29 = arith.constant 0 : index
      %c0_30 = arith.constant 0 : index
      %61 = vector.load %arg11[%c0_29, %c0_30] : memref<16x32xf32, #tpu.memory_space<vmem>>, vector<16x32xf32>
      tpu.vector_store %arg11[%c0_29, %c0_30], %60 {strides = array<i32>} : memref<16x32xf32, #tpu.memory_space<vmem>>, vector<16x32xf32>,
      %cst_31 = arith.constant 0.000000e+00 : f32
      %62 = vector.broadcast %cst_31 : f32 to vector<16x32xf32>
      %c0_32 = arith.constant 0 : index
      %c0_33 = arith.constant 0 : index
      %63 = vector.load %arg12[%c0_32, %c0_33] : memref<16x32xf32, #tpu.memory_space<vmem>>, vector<16x32xf32>
      tpu.vector_store %arg12[%c0_32, %c0_33], %62 {strides = array<i32>} : memref<16x32xf32, #tpu.memory_space<vmem>>, vector<16x32xf32>,
    } else {
    }
    %c0 = arith.constant 0 : index
    %c0_1 = arith.constant 0 : index
    %3 = vector.load %arg4[%c0, %c0_1] : memref<8x1xi32, #tpu.memory_space<vmem>>, vector<8x1xi32>
    %4 = tpu.iota {dimensions = array<i32: 0>} : vector<16x1xi32>
    %c8_i32 = arith.constant 8 : i32
    %5 = vector.broadcast %c8_i32 : i32 to vector<16x1xi32>
    %6 = arith.cmpi slt, %4, %5 : vector<16x1xi32>
    %c7_i32 = arith.constant 7 : i32
    %7 = arith.subi %c7_i32, %arg1 : i32
    %8 = vector.broadcast %arg1 : i32 to vector<16x1xi32>
    %9 = vector.broadcast %7 : i32 to vector<16x1xi32>
    %10 = arith.select %6, %8, %9 : vector<16x1xi1>, vector<16x1xi32>
    %11 = tpu.concatenate %3, %3 in 0 : vector<8x1xi32>, vector<8x1xi32> -> vector<16x1xi32>
    %12 = arith.cmpi slt, %10, %11 : vector<16x1xi32>
    %c0_2 = arith.constant 0 : index
    %c0_3 = arith.constant 0 : index
    %13 = vector.load %arg11[%c0_2, %c0_3] : memref<16x32xf32, #tpu.memory_space<vmem>>, vector<16x32xf32>
    %14 = arith.truncf %13 : vector<16x32xf32> to vector<16x32xbf16>
    %15 = vector.extract_strided_slice %14 {offsets = [0, 0], sizes = [8, 32], strides = [1, 1]} : vector<16x32xbf16> to vector<8x32xbf16>
    %c0_4 = arith.constant 0 : index
    %c0_5 = arith.constant 0 : index
    %16 = vector.load %arg5[%c0_4, %c0_5] : memref<32x128xbf16, #tpu.memory_space<vmem>>, vector<32x128xbf16>
    %cst = arith.constant dense<0.000000e+00> : vector<8x128xf32>
    %17 = tpu.matmul %15, %16, %cst {dimension_numbers = #tpu.dot_dimension_numbers<[1], [0], [0], [1], [0, 0, 1, 1], [], []>} : vector<8x32xbf16>, vector<32x128xbf16>, vector<8x128xf32> -> vector<8x128xf32>
    %18 = vector.extract_strided_slice %14 {offsets = [8, 0], sizes = [8, 32], strides = [1, 1]} : vector<16x32xbf16> to vector<8x32xbf16>
    %c0_6 = arith.constant 0 : index
    %c0_7 = arith.constant 0 : index
    %19 = vector.load %arg6[%c0_6, %c0_7] : memref<32x128xbf16, #tpu.memory_space<vmem>>, vector<32x128xbf16>
    %cst_8 = arith.constant dense<0.000000e+00> : vector<8x128xf32>
    %20 = tpu.matmul %18, %19, %cst_8 {dimension_numbers = #tpu.dot_dimension_numbers<[1], [0], [0], [1], [0, 0, 1, 1], [], []>} : vector<8x32xbf16>, vector<32x128xbf16>, vector<8x128xf32> -> vector<8x128xf32>
    %c0_9 = arith.constant 0 : index
    %c0_10 = arith.constant 0 : index
    %c0_11 = arith.constant 0 : index
    %21 = vector.load %arg2[%c0_9, %c0_10, %c0_11] : memref<1x8x128xbf16, #tpu.memory_space<vmem>>, vector<1x8x128xbf16>
    %22 = vector.shape_cast %21 : vector<1x8x128xbf16> to vector<8x128xbf16>
    %23 = arith.extf %22 : vector<8x128xbf16> to vector<8x128xf32>
    %24 = arith.addf %23, %17 : vector<8x128xf32>
    %c0_12 = arith.constant 0 : index
    %c0_13 = arith.constant 0 : index
    %c0_14 = arith.constant 0 : index
    %25 = vector.load %arg3[%c0_12, %c0_13, %c0_14] : memref<1x8x128xbf16, #tpu.memory_space<vmem>>, vector<1x8x128xbf16>
    %26 = vector.shape_cast %25 : vector<1x8x128xbf16> to vector<8x128xbf16>
    %27 = arith.extf %26 : vector<8x128xbf16> to vector<8x128xf32>
    %28 = arith.addf %27, %20 : vector<8x128xf32>
    %29 = tpu.concatenate %24, %28 in 0 : vector<8x128xf32>, vector<8x128xf32> -> vector<16x128xf32>
    %30 = vector.extract_strided_slice %29 {offsets = [0, 0], sizes = [16, 96], strides = [1, 1]} : vector<16x128xf32> to vector<16x96xf32>
    %31 = arith.negf %30 : vector<16x96xf32>
    %32 = math.exp %31 : vector<16x96xf32>
    %cst_15 = arith.constant 1.000000e+00 : f32
    %33 = vector.broadcast %cst_15 : f32 to vector<16x96xf32>
    %34 = arith.addf %33, %32 : vector<16x96xf32>
    %35 = arith.divf %33, %34 : vector<16x96xf32>
    %36 = vector.extract_strided_slice %29 {offsets = [0, 96], sizes = [16, 32], strides = [1, 1]} : vector<16x128xf32> to vector<16x32xf32>
    %37 = math.tanh %36 : vector<16x32xf32>
    %38 = vector.extract_strided_slice %35 {offsets = [0, 0], sizes = [16, 32], strides = [1, 1]} : vector<16x96xf32> to vector<16x32xf32>
    %39 = vector.extract_strided_slice %35 {offsets = [0, 32], sizes = [16, 32], strides = [1, 1]} : vector<16x96xf32> to vector<16x32xf32>
    %40 = vector.extract_strided_slice %35 {offsets = [0, 64], sizes = [16, 32], strides = [1, 1]} : vector<16x96xf32> to vector<16x32xf32>
    %c0_16 = arith.constant 0 : index
    %c0_17 = arith.constant 0 : index
    %41 = vector.load %arg12[%c0_16, %c0_17] : memref<16x32xf32, #tpu.memory_space<vmem>>, vector<16x32xf32>
    %42 = arith.mulf %39, %41 : vector<16x32xf32>
    %43 = arith.mulf %38, %37 : vector<16x32xf32>
    %44 = arith.addf %42, %43 : vector<16x32xf32>
    %45 = math.tanh %44 : vector<16x32xf32>
    %46 = arith.mulf %40, %45 : vector<16x32xf32>
    %c0_18 = arith.constant 0 : index
    %c0_19 = arith.constant 0 : index
    %47 = vector.load %arg11[%c0_18, %c0_19] : memref<16x32xf32, #tpu.memory_space<vmem>>, vector<16x32xf32>
    %48 = vector.shape_cast %12 : vector<16x1xi1> to vector<16x1xi1>
    %49 = vector.broadcast %48 : vector<16x1xi1> to vector<16x32xi1>
    %50 = arith.select %49, %46, %47 : vector<16x32xi1>, vector<16x32xf32>
    %c0_20 = arith.constant 0 : index
    %c0_21 = arith.constant 0 : index
    %51 = vector.load %arg11[%c0_20, %c0_21] : memref<16x32xf32, #tpu.memory_space<vmem>>, vector<16x32xf32>
    tpu.vector_store %arg11[%c0_20, %c0_21], %50 {strides = array<i32>} : memref<16x32xf32, #tpu.memory_space<vmem>>, vector<16x32xf32>,
    %c0_22 = arith.constant 0 : index
    %c0_23 = arith.constant 0 : index
    %52 = vector.load %arg12[%c0_22, %c0_23] : memref<16x32xf32, #tpu.memory_space<vmem>>, vector<16x32xf32>
    %53 = vector.shape_cast %12 : vector<16x1xi1> to vector<16x1xi1>
    %54 = vector.broadcast %53 : vector<16x1xi1> to vector<16x32xi1>
    %55 = arith.select %54, %44, %52 : vector<16x32xi1>, vector<16x32xf32>
    %c0_24 = arith.constant 0 : index
    %c0_25 = arith.constant 0 : index
    %56 = vector.load %arg12[%c0_24, %c0_25] : memref<16x32xf32, #tpu.memory_space<vmem>>, vector<16x32xf32>
    tpu.vector_store %arg12[%c0_24, %c0_25], %55 {strides = array<i32>} : memref<16x32xf32, #tpu.memory_space<vmem>>, vector<16x32xf32>,
    %c7_i32_26 = arith.constant 7 : i32
    %57 = arith.cmpi eq, %arg1, %c7_i32_26 : i32
    %58 = arith.extui %57 : i1 to i32
    %c0_i32_27 = arith.constant 0 : i32
    %59 = arith.cmpi ne, %58, %c0_i32_27 : i32
    scf.if %59 {
      %c0_28 = arith.constant 0 : index
      %c0_29 = arith.constant 0 : index
      %60 = vector.load %arg11[%c0_28, %c0_29] : memref<16x32xf32, #tpu.memory_space<vmem>>, vector<16x32xf32>
      %61 = vector.extract_strided_slice %60 {offsets = [0, 0], sizes = [8, 32], strides = [1, 1]} : vector<16x32xf32> to vector<8x32xf32>
      %62 = arith.truncf %61 : vector<8x32xf32> to vector<8x32xbf16>
      %63 = vector.extract_strided_slice %60 {offsets = [8, 0], sizes = [8, 32], strides = [1, 1]} : vector<16x32xf32> to vector<8x32xf32>
      %64 = arith.truncf %63 : vector<8x32xf32> to vector<8x32xbf16>
      %c0_30 = arith.constant 0 : index
      %c0_31 = arith.constant 0 : index
      %65 = vector.load %arg7[%c0_30, %c0_31] : memref<32x1xbf16, #tpu.memory_space<vmem>>, vector<32x1xbf16>
      %cst_32 = arith.constant dense<0.000000e+00> : vector<8x1xf32>
      %66 = tpu.matmul %62, %65, %cst_32 {dimension_numbers = #tpu.dot_dimension_numbers<[1], [0], [0], [1], [0, 0, 1, 1], [], []>} : vector<8x32xbf16>, vector<32x1xbf16>, vector<8x1xf32> -> vector<8x1xf32>
      %c0_33 = arith.constant 0 : index
      %c0_34 = arith.constant 0 : index
      %67 = vector.load %arg8[%c0_33, %c0_34] : memref<32x1xbf16, #tpu.memory_space<vmem>>, vector<32x1xbf16>
      %cst_35 = arith.constant dense<0.000000e+00> : vector<8x1xf32>
      %68 = tpu.matmul %64, %67, %cst_35 {dimension_numbers = #tpu.dot_dimension_numbers<[1], [0], [0], [1], [0, 0, 1, 1], [], []>} : vector<8x32xbf16>, vector<32x1xbf16>, vector<8x1xf32> -> vector<8x1xf32>
      %69 = arith.addf %66, %68 : vector<8x1xf32>
      %c0_36 = arith.constant 0 : index
      %c0_37 = arith.constant 0 : index
      %70 = vector.load %arg9[%c0_36, %c0_37] : memref<1x1xf32, #tpu.memory_space<vmem>>, vector<1x1xf32>
      %71 = vector.broadcast %70 : vector<1x1xf32> to vector<8x1xf32>
      %72 = arith.addf %69, %71 : vector<8x1xf32>
      %73 = arith.negf %72 : vector<8x1xf32>
      %74 = math.exp %73 : vector<8x1xf32>
      %cst_38 = arith.constant 1.000000e+00 : f32
      %75 = vector.broadcast %cst_38 : f32 to vector<8x1xf32>
      %76 = arith.addf %75, %74 : vector<8x1xf32>
      %77 = arith.divf %75, %76 : vector<8x1xf32>
      %c0_39 = arith.constant 0 : index
      %c0_40 = arith.constant 0 : index
      %78 = vector.load %arg10[%c0_39, %c0_40] : memref<8x1xf32, #tpu.memory_space<vmem>>, vector<8x1xf32>
      tpu.vector_store %arg10[%c0_39, %c0_40], %77 {strides = array<i32>} : memref<8x1xf32, #tpu.memory_space<vmem>>, vector<8x1xf32>,
    } else {
    }
    return
  }
  func.func @transform_0(%arg0: i32, %arg1: i32) -> (i32, i32, i32) {
    %c0_i32 = arith.constant 0 : i32
    %c0_i32_0 = arith.constant 0 : i32
    return %arg1, %arg0, %c0_i32 : i32, i32, i32
  }
  func.func @transform_1(%arg0: i32, %arg1: i32) -> (i32, i32, i32) {
    %c7_i32 = arith.constant 7 : i32
    %0 = arith.subi %c7_i32, %arg1 : i32
    %c0_i32 = arith.constant 0 : i32
    %c0_i32_0 = arith.constant 0 : i32
    return %0, %arg0, %c0_i32 : i32, i32, i32
  }
  func.func @transform_2(%arg0: i32, %arg1: i32) -> (i32, i32) {
    %c0_i32 = arith.constant 0 : i32
    %c0_i32_0 = arith.constant 0 : i32
    return %arg0, %c0_i32 : i32, i32
  }
  func.func @transform_3(%arg0: i32, %arg1: i32) -> (i32, i32) {
    %c0_i32 = arith.constant 0 : i32
    %c0_i32_0 = arith.constant 0 : i32
    %c0_i32_1 = arith.constant 0 : i32
    return %c0_i32, %c0_i32_0 : i32, i32
  }
  func.func @transform_4(%arg0: i32, %arg1: i32) -> (i32, i32) {
    %c0_i32 = arith.constant 0 : i32
    %c0_i32_0 = arith.constant 0 : i32
    %c0_i32_1 = arith.constant 0 : i32
    return %c0_i32, %c0_i32_0 : i32, i32
  }
  func.func @transform_5(%arg0: i32, %arg1: i32) -> (i32, i32) {
    %c0_i32 = arith.constant 0 : i32
    %c0_i32_0 = arith.constant 0 : i32
    %c0_i32_1 = arith.constant 0 : i32
    return %c0_i32, %c0_i32_0 : i32, i32
  }
  func.func @transform_6(%arg0: i32, %arg1: i32) -> (i32, i32) {
    %c0_i32 = arith.constant 0 : i32
    %c0_i32_0 = arith.constant 0 : i32
    %c0_i32_1 = arith.constant 0 : i32
    return %c0_i32, %c0_i32_0 : i32, i32
  }
  func.func @transform_7(%arg0: i32, %arg1: i32) -> (i32, i32) {
    %c0_i32 = arith.constant 0 : i32
    %c0_i32_0 = arith.constant 0 : i32
    %c0_i32_1 = arith.constant 0 : i32
    return %c0_i32, %c0_i32_0 : i32, i32
  }
  func.func @transform_8(%arg0: i32, %arg1: i32) -> (i32, i32) {
    %c0_i32 = arith.constant 0 : i32
    %c0_i32_0 = arith.constant 0 : i32
    return %arg0, %c0_i32 : i32, i32
  }
}

</mosaic_0001>

<bundles_post_ra>
// kernel: classifier_forward.5
= control target key start
LH: loop header
LB: loop body
LE: loop exit
PB: predicated region body
PF: predicated region fallthrough
CT: control target
= control target key end

     0   :  { %s951_s21 = smov 0   ;;  %s953_s22 = smov 0   ;;  %s1067_s0 = inlined_call_operand.vmem [shape: bf16[8,8,128], index: 0, kind: input, shape index: {}]   ;;  %s1068_s1 = inlined_call_operand.vmem [shape: bf16[8,8,128], index: 1, kind: input, shape index: {}]   ;;  %s1069_s2 = inlined_call_operand.vmem [shape: s32[8,1], index: 2, kind: input, shape index: {}]   ;;  %s1070_s3 = inlined_call_operand.vmem [shape: bf16[32,128], index: 3, kind: input, shape index: {}]   ;;  %s1071_s4 = inlined_call_operand.vmem [shape: bf16[32,128], index: 4, kind: input, shape index: {}]   ;;  %s1072_s5 = inlined_call_operand.vmem [shape: bf16[8,8,32], index: 5, kind: output, shape index: {0}]   ;;  %s1073_s6 = inlined_call_operand.vmem [shape: bf16[8,8,32], index: 6, kind: output, shape index: {1}]  }
   0x1   :  { %s955_s23 = smov 0  }
   0x2 LB: > { %s26_s24 = sadd.s32 1, %s903_s22  ;;  %p790_p0 = scmp.ge.s32.totalorder %s907_s23, 1  ;;  %s907_s23 = sphi %s955_s23, %s17_s23   ;;  %s903_s22 = sphi %s953_s22, %s1075_s22   ;;  %s899_s21 = sphi %s951_s21, %s1074_s21  }
   0x3   : > { %p27_p1 = scmp.ge.s32.totalorder %s26_s24, 8  ;;  %p264_p2 = scmp.lt.s32.totalorder %s907_s23, 9 }
   0x5   : > { %s1077_s24 = smov (%p27_p1, %s26_s24), 0  ;;  %p265_p3 = pnand %p790_p0, %p264_p2 }
   0x6   : > { %p318_p4 = scmp.lt.s32.totalorder (!%p265_p3), %s899_s21, 7  ;;  %s973_s25 = ssub.s32 (!%p265_p3), 7, %s899_s21 }
   0x7   : > { %268 = sbr.rel (%p265_p3) target bundleno = 750 (0x2ee), region = 40  ;;  %p326_p5 = scmp.lt.s32.totalorder (!%p265_p3), %s973_s25, 7 }
   0x8   : > { %p795_p6 = scmp.ne.s32.totalorder (!%p265_p3), %s899_s21, 0 }
   0xe   : > { %s319_s26 = scalar_select %p318_p4, %s899_s21, 7 }
   0xf   : > { %s327_s27 = scalar_select %p326_p5, %s973_s25, 7 }
  0x10   : > { %s791_s28 = sshll.u32 %s319_s26, 2  ;;  %358 = sbr.rel (%p795_p6) target bundleno = 23 (0x17), region = 44  ;;  %vm359_vm0 = vcmask (!%p795_p6), 261120   ;;  %v909_v0 = vmov (!%p795_p6), 0.0  }
  0x11   : > { %s981_s7 = scalar_lea.vmem %s1067_s0, %s791_s28  ;;  %s792_s8 = sshll.u32 %s327_s27, 2  ;;  %360 = vst.msk [vmem:[#allocation2] sm:$0xff] (!%p795_p6), %vm359_vm0, %v909_v0  ;;  %361 = vst.msk [vmem:[#allocation2 + $0x8] sm:$0xff] (!%p795_p6), %vm359_vm0, %v909_v0 }
  0x12   : > { %s986_s11 = scalar_lea.vmem %s1068_s1, %s792_s8  ;;  %s991_s14 = scalar_lea.vmem %s1072_s5, %s791_s28  ;;  %362 = vst.msk [vmem:[#allocation3] sm:$0xff] (!%p795_p6), %vm359_vm0, %v909_v0  ;;  %363 = vst.msk [vmem:[#allocation3 + $0x8] sm:$0xff] (!%p795_p6), %vm359_vm0, %v909_v0 }
  0x13   : > { %s996_s17 = scalar_lea.vmem %s1073_s6, %s792_s8 }
  0x17 PF: > { %v865_v1 = vld [vmem:[%s1070_s3] sm:$0xff]   ;;  %v910_v2 = vmov 0.0   ;;  %v867_v4 = vld [vmem:[%s1070_s3 + $0x8] sm:$0xff]   ;;  %vm911_vm1 = vmmov 0   ;;  %s912_s8 = smov 32   ;;  %vm396_vm2 = vcmask 261120   ;;  %v371_v35 = vstv %s899_s21 }
  0x18   : > { %816 = vmatprep.subr.bf16.mxu0 %v910_v2  ;;  %824 = vmatprep.subr.bf16.mxu1 %v910_v2  ;;  %v866_v3 = vld [vmem:[%s1071_s4] sm:$0xff]   ;;  %v868_v5 = vld [vmem:[%s1071_s4 + $0x8] sm:$0xff]   ;;  %v913_v26 = vmov 0   ;;  %v372_v40 = vstv %s973_s25  ;;  %s914_s21 = smov 64   ;;  %s915_s25 = smov 96   ;;  %vm625_vm7 = vcmask 257024  }
  0x19   : > { %817 = vmatpush3.bf16.msra.mxu0 %v865_v1  ;;  %820 = vmatprep.mubr.msk.bf16.mxu0 %vm911_vm1, %v910_v2  ;;  %v1011_v6 = vld [vmem:[#allocation2] sm:$0xff]  ;;  %v1013_v7 = vld [vmem:[#allocation2 + $0x8] sm:$0xff]  ;;  %v1015_v8 = vld [vmem:[#allocation3] sm:$0xff] }
  0x1a   : > { %825 = vmatpush3.bf16.msra.mxu1 %v866_v3  ;;  %818 = vmatprep.subr.bf16.mxu0 %v910_v2  ;;  %v379_v9 = vpack.c.bf16 %v1013_v7, %v1011_v6  ;;  %v1021_v10 = vld [vmem:[#allocation3 + $0x8] sm:$0xff]  ;;  %v501_v12 = vld [vmem:[%s981_s7] sm:$0xf] }
  0x1b   : > { %826 = vmatprep.subr.bf16.mxu1 %v910_v2  ;;  %828 = vmatprep.mubr.msk.bf16.mxu1 %vm911_vm1, %v910_v2  ;;  %v504_v13 = vld [vmem:[%s986_s11] sm:$0xf]  ;;  %v502_v14 = vunpack.c.l.bf16 %v501_v12 }
  0x1c   : > { %525 = vrot.lane.b32.xlu1 %v1015_v8, %s912_s8  ;;  %v445_v11 = vrot.slane %v379_v9, 4  ;;  %v505_v15 = vunpack.c.l.bf16 %v504_v13  ;;  %863 = vset.pattern.permute.xlu0 %v913_v26  ;;  %v364_v38 = vld [vmem:[%s1069_s2] sm:$0xff] }
  0x1d   : > { %819 = vmatpush3.bf16.msra.mxu0 %v867_v4  ;;  %864 = vset.pattern.permute.xlu1 %v913_v26  ;;  %vm375_vm3 = vcmp.lt.s32.totalorder %v371_v35, %v364_v38  ;;  %vm376_vm4 = vcmp.lt.s32.totalorder %v372_v40, %v364_v38 }
  0x1e   : > { %827 = vmatpush3.bf16.msra.mxu1 %v868_v5  ;;  %v565_v43 = vsel %vm375_vm3, 1, %v913_v26  ;;  %v566_v45 = vsel %vm376_vm4, 1, %v913_v26 }
  0x20   : > { %821 = vmatmul.mubr.msk.bf16.vlgmr.msra.gmra.mrb[0].mxu0 %vm396_vm2, %v379_v9  ;;  %527 = vrot.lane.b32.xlu1 %v1021_v10, %s912_s8 }
  0x21   : > { %829 = vmatmul.mubr.msk.bf16.vlgmr.msra.gmra.mrb[0].mxu1 %vm396_vm2, %v445_v11 }
  0x8e   : > { %v526_v46 = vpop.permute.xlu1 %525 }
  0x92   : > { %v528_v48 = vpop.permute.xlu1 %527 }
  0xf3   : > { %v434_v16 = vpop.f32.mrb[0].mxu0 }
  0xf4   : > { %v503_v17 = vadd.f32 %v502_v14, %v434_v16  ;;  %v822_v18 = vpop.f32.mrb[1].mxu0  ;;  %v495_v19 = vpop.f32.mrb[0].mxu1 }
  0xf5   : > { %v506_v20 = vadd.f32 %v505_v15, %v495_v19  ;;  %v437_v21 = vpop.f32.mrb[2].mxu0  ;;  %v830_v22 = vpop.f32.mrb[1].mxu1 }
  0xf6   : > { %869 = vtanh.f32 %v503_v17  ;;  %v823_v23 = vpop.f32.mrb[3].mxu0  ;;  %v498_v24 = vpop.f32.mrb[2].mxu1  ;;  %v802_v29 = vmul.f32 -1.442695, %v503_v17 }
  0xf7   : > { %v831_v25 = vpop.f32.mrb[3].mxu1  ;;  %871 = vtanh.f32 %v506_v20  ;;  %v803_v30 = vmul.f32 -1.442695, %v506_v20 }
  0xf8   : > { %873 = vpow2.f32 %v802_v29 }
  0xf9   : > { %875 = vpow2.f32 %v803_v30 }
 0x100   : > { %v870_v27 = vpop.eup %869 }
 0x101   : > { %535 = vrot.lane.b32.xlu0 %v870_v27, %s912_s8  ;;  %v872_v28 = vpop.eup %871 }
 0x102   : > { %v874_v31 = vpop.eup %873 }
 0x103   : > { %v513_v32 = vadd.f32 1.0, %v874_v31  ;;  %v876_v33 = vpop.eup %875 }
 0x104   : > { %v514_v34 = vadd.f32 1.0, %v876_v33 }
 0x105   : > { %537 = vrot.lane.b32.xlu0 %v872_v28, %s912_s8  ;;  %877 = vrcp.f32 %v513_v32 }
 0x106   : > { %879 = vrcp.f32 %v514_v34 }
 0x10f   : > { %v878_v36 = vpop.eup %877 }
 0x110   : > { %v880_v41 = vpop.eup %879  ;;  %v531_v47 = vmul.f32 %v878_v36, %v526_v46 }
 0x111   : > { %v532_v51 = vmul.f32 %v880_v41, %v528_v48 }
 0x173   : > { %v536_v37 = vpop.permute.xlu0 %535 }
 0x174   : > { %v541_v39 = vmul.f32 %v878_v36, %v536_v37 }
 0x176   : > { %545 = vrot.lane.b32.xlu0 %v541_v39, %s912_s8 }
 0x177   : > { %v538_v42 = vpop.permute.xlu0 %537 }
 0x178   : > { %v542_v44 = vmul.f32 %v880_v41, %v538_v42 }
 0x17a   : > { %547 = vrot.lane.b32.xlu1 %v542_v44, %s912_s8  ;;  %568 = vperm.xlu0 %863, %v565_v43  }
 0x17e   : > { %571 = vperm.xlu1 %864, %v566_v45   ;;  %579 = vrot.lane.b32.xlu0 %v1013_v7, %s914_s21 }
 0x182   : > { %577 = vrot.lane.b32.xlu1 %v1011_v6, %s914_s21 }
 0x1e8   : > { %v546_v49 = vpop.permute.xlu0 %545 }
 0x1e9   : > { %v551_v50 = vadd.f32 %v546_v49, %v531_v47 }
 0x1eb   : > { %881 = vtanh.f32 %v551_v50 }
 0x1ec   : > { %v548_v52 = vpop.permute.xlu1 %547 }
 0x1ed   : > { %v552_v53 = vadd.f32 %v548_v52, %v532_v51 }
 0x1ef   : > { %883 = vtanh.f32 %v552_v53 }
 0x1f5   : > { %v882_v54 = vpop.eup %881 }
 0x1f6   : > { %557 = vrot.lane.b32.xlu1 %v882_v54, %s912_s8 }
 0x1f9   : > { %v884_v55 = vpop.eup %883  ;;  %v569_v57 = vpop.permute.xlu0 %568 }
 0x1fa   : > { %599 = vrot.lane.b32.xlu1 %v1015_v8, %s912_s8  ;;  %559 = vrot.lane.b32.xlu0 %v884_v55, %s912_s8  ;;  %vm573_vm5 = vcmp.eq.s32.totalorder %v569_v57, 1 }
 0x1fd   : > { %v572_v56 = vpop.permute.xlu1 %571  ;;  %v580_v59 = vpop.permute.xlu0 %579 }
 0x1fe   : > { %601 = vrot.lane.b32.xlu0 %v1021_v10, %s912_s8  ;;  %vm574_vm6 = vcmp.eq.s32.totalorder %v572_v56, 1 }
 0x201   : > { %v578_v58 = vpop.permute.xlu1 %577 }
 0x268   : > { %v558_v60 = vpop.permute.xlu1 %557 }
 0x269   : > { %v563_v63 = vmul.f32 %v878_v36, %v558_v60 }
 0x26b   : > { %v617_v2 = vsel %vm573_vm5, %v563_v63, 0.0  ;;  %v583_v4 = vsel %vm573_vm5, %v563_v63, %v578_v58 }
 0x26c   : > { %v600_v61 = vpop.permute.xlu1 %599  ;;  %v560_v62 = vpop.permute.xlu0 %559  ;;  %v808_v6 = vpack.c.bf16 %v617_v2, %v617_v2 }
 0x26d   : > { %v605_v0 = vsel %vm573_vm5, %v551_v50, %v600_v61  ;;  %v564_v3 = vmul.f32 %v880_v41, %v560_v62 }
 0x26e   : > { %609 = vrot.lane.b32.xlu1 %v605_v0, %s915_s25 }
 0x26f   : > { %v627_v7 = vsel %vm574_vm6, %v564_v3, 0.0  ;;  %v584_v8 = vsel %vm574_vm6, %v564_v3, %v580_v59 }
 0x270   : > { %v602_v1 = vpop.permute.xlu0 %601  ;;  %v809_v9 = vpack.c.bf16 %v627_v7, %v627_v7 }
 0x271   : > { %v606_v5 = vsel %vm574_vm6, %v552_v53, %v602_v1 }
 0x272   : > { %587 = vrot.lane.b32.xlu1 %v583_v4, %s914_s21  ;;  %611 = vrot.lane.b32.xlu0 %v606_v5, %s915_s25 }
 0x276   : > { %622 = vrot.lane.b32.xlu1 %v808_v6, %s914_s21  ;;  %589 = vrot.lane.b32.xlu0 %v584_v8, %s914_s21 }
 0x27a   : > { %632 = vrot.lane.b32.xlu0 %v809_v9, %s914_s21 }
 0x2e0   : > { %v610_v10 = vpop.permute.xlu1 %609 }
 0x2e1   : > { %615 = vst.msk [vmem:[#allocation3] sm:$0xff] %vm396_vm2, %v610_v10 }
 0x2e4   : > { %v588_v11 = vpop.permute.xlu1 %587  ;;  %v612_v12 = vpop.permute.xlu0 %611 }
 0x2e5   : > { %593 = vst.msk [vmem:[#allocation2] sm:$0xff] %vm396_vm2, %v588_v11  ;;  %616 = vst.msk [vmem:[#allocation3 + $0x8] sm:$0xff] %vm396_vm2, %v612_v12 }
 0x2e8   : > { %v623_v13 = vpop.permute.xlu1 %622  ;;  %v590_v14 = vpop.permute.xlu0 %589 }
 0x2e9   : > { %626 = vst.msk [vmem:[%s991_s14] sm:$0xf] %vm625_vm7, %v623_v13 }
 0x2ea   : > { %594 = vst.msk [vmem:[#allocation2 + $0x8] sm:$0xff] %vm396_vm2, %v590_v14 }
 0x2ec   : > { %v633_v15 = vpop.permute.xlu0 %632 }
 0x2ed   : > { %635 = vst.msk [vmem:[%s996_s17] sm:$0xf] %vm625_vm7, %v633_v15 }
 0x2ee PF: > { %s17_s23 = sadd.s32 1, %s907_s23   ;;  %s1074_s21 = smov %s903_s22 }
 0x2ef   : > { %p14_p7 = scmp.ge.s32.totalorder %s17_s23, 10   ;;  %s1075_s22 = smov %s1077_s24 }
 0x2f1   :  { %16 = sbr.rel (!%p14_p7) target bundleno = 2 (0x2), region = 92 }

// kernel: classifier_forward.6
= control target key start
LH: loop header
LB: loop body
LE: loop exit
PB: predicated region body
PF: predicated region fallthrough
CT: control target
= control target key end

     0   :  { %v553_v1 = vmov 0   ;;  %vm87_vm0 = vcmask 261120   ;;  %v300_v17 = vlaneseq  ;;  %s692_s3 = inlined_call_operand.vmem [shape: bf16[32,256], index: 3, kind: input, shape index: {}]   ;;  %s693_s2 = inlined_call_operand.vmem [shape: bf16[32,256], index: 2, kind: input, shape index: {}]   ;;  %s694_s1 = inlined_call_operand.vmem [shape: bf16[64,32], index: 1, kind: input, shape index: {}]   ;;  %s695_s0 = inlined_call_operand.vmem [shape: bf16[64,32], index: 0, kind: input, shape index: {}]   ;;  %s696_s4 = inlined_call_operand.vmem [shape: f32[1,256], index: 4, kind: input, shape index: {}]   ;;  %s697_s5 = inlined_call_operand.vmem [shape: bf16[64,128], index: 5, kind: output, shape index: {0}]   ;;  %s698_s6 = inlined_call_operand.vmem [shape: bf16[64,128], index: 6, kind: output, shape index: {1}]  }
   0x1   :  { %v533_v0 = vld [vmem:[%s692_s3 + $0x4] ss:$8 sps:$4 sm:$0xff]   ;;  %132 = vmatprep.mubr.bf16.mxu1 %v553_v1  ;;  %257 = vmatprep.mubr.bf16.mxu0 %v553_v1  ;;  %v537_v3 = vld [vmem:[%s692_s3] ss:$8 sps:$4 sm:$0xff]   ;;  %v539_v5 = vld [vmem:[%s692_s3 + $0x14] ss:$8 sps:$4 sm:$0xff]  }
   0x2   :  { %v535_v2 = vld [vmem:[%s693_s2 + $0x4] ss:$8 sps:$4 sm:$0xff]   ;;  %100 = vmatprep.subr.bf16.mxu1 %v533_v0  ;;  %v538_v4 = vld [vmem:[%s693_s2] ss:$8 sps:$4 sm:$0xff]   ;;  %v541_v6 = vld [vmem:[%s693_s2 + $0x14] ss:$8 sps:$4 sm:$0xff]  }
   0x3   :  { %225 = vmatprep.subr.bf16.mxu0 %v535_v2  ;;  %101 = vmatpush1.bf16.msra.mxu1 %v537_v3  ;;  %v543_v7 = vld [vmem:[%s692_s3 + $0x10] ss:$8 sps:$4 sm:$0xff]   ;;  %v545_v9 = vld [vmem:[%s694_s1] sm:$0xff]   ;;  %v547_v11 = vld [vmem:[%s694_s1 + $0x8] sm:$0xff]   ;;  %v301_v18 = vshrl.u32 %v300_v17, 7 }
   0x4   :  { %226 = vmatpush1.bf16.msra.mxu0 %v538_v4  ;;  %102 = vmatprep.subr.bf16.mxu1 %v539_v5  ;;  %v544_v8 = vld [vmem:[%s693_s2 + $0x10] ss:$8 sps:$4 sm:$0xff]   ;;  %v546_v10 = vld [vmem:[%s695_s0] sm:$0xff]   ;;  %v548_v12 = vld [vmem:[%s695_s0 + $0x8] sm:$0xff]  }
   0x5   :  { %227 = vmatprep.subr.bf16.mxu0 %v541_v6  ;;  %v549_v13 = vld [vmem:[%s694_s1 + $0x10] sm:$0xff]   ;;  %v551_v15 = vld [vmem:[%s694_s1 + $0x18] sm:$0xff]   ;;  %v302_v19 = vsub.s32 0, %v301_v18  ;;  %v298_v20 = vld [vmem:[%s696_s4] sm:$0x3]  ;;  %v306_v21 = vsub.s32 1, %v301_v18 }
   0x6   :  { %v550_v14 = vld [vmem:[%s695_s0 + $0x10] sm:$0xff]   ;;  %v552_v16 = vld [vmem:[%s695_s0 + $0x18] sm:$0xff]  }
   0x7   :  { %103 = vmatpush1.bf16.msra.mxu1 %v543_v7  ;;  %v648_v25 = vrot.slane %v298_v20, %v302_v19  ;;  %v650_v29 = vrot.slane %v298_v20, %v306_v21 }
   0x8   :  { %228 = vmatpush1.bf16.msra.mxu0 %v544_v8 }
   0xa   :  { %422 = vmatmul.mubr.msk.bf16.vlgmr.msra.gmra.mrb[0].mxu1 %vm87_vm0, %v545_v9 }
   0xb   :  { %434 = vmatmul.mubr.msk.bf16.vlgmr.msra.gmra.mrb[0].mxu0 %vm87_vm0, %v546_v10  ;;  %142 = vmatprep.mubr.bf16.mxu1 %v553_v1 }
   0xc   :  { %267 = vmatprep.mubr.bf16.mxu0 %v553_v1 }
  0x12   :  { %423 = vmatmul.mubr.msk.bf16.gmra.mrb[4].mxu1 %vm87_vm0, %v547_v11 }
  0x13   :  { %435 = vmatmul.mubr.msk.bf16.gmra.mrb[4].mxu0 %vm87_vm0, %v548_v12  ;;  %152 = vmatprep.mubr.bf16.mxu1 %v553_v1 }
  0x14   :  { %277 = vmatprep.mubr.bf16.mxu0 %v553_v1 }
  0x1a   :  { %424 = vmatmul.mubr.msk.bf16.gmra.mrb[8].mxu1 %vm87_vm0, %v549_v13 }
  0x1b   :  { %436 = vmatmul.mubr.msk.bf16.gmra.mrb[8].mxu0 %vm87_vm0, %v550_v14  ;;  %162 = vmatprep.mubr.bf16.mxu1 %v553_v1 }
  0x1c   :  { %287 = vmatprep.mubr.bf16.mxu0 %v553_v1 }
  0x22   :  { %425 = vmatmul.mubr.msk.bf16.gmra.mrb[12].mxu1 %vm87_vm0, %v551_v15 }
  0x23   :  { %437 = vmatmul.mubr.msk.bf16.gmra.mrb[12].mxu0 %vm87_vm0, %v552_v16 }
  0xdd   :  { %v134_v22 = vpop.f32.mrb[0].mxu1 }
  0xde   :  { %v259_v23 = vpop.f32.mrb[0].mxu0  ;;  %v136_v26 = vpop.f32.mrb[1].mxu1 }
  0xdf   :  { %v260_v24 = vadd.f32 %v259_v23, %v134_v22  ;;  %v261_v27 = vpop.f32.mrb[1].mxu0  ;;  %v138_v30 = vpop.f32.mrb[2].mxu1 }
  0xe0   :  { %v262_v28 = vadd.f32 %v261_v27, %v136_v26  ;;  %v263_v31 = vpop.f32.mrb[2].mxu0  ;;  %v140_v33 = vpop.f32.mrb[3].mxu1 }
  0xe1   :  { %v264_v32 = vadd.f32 %v263_v31, %v138_v30  ;;  %v265_v34 = vpop.f32.mrb[3].mxu0  ;;  %v310_v36 = vadd.f32 %v648_v25, %v260_v24 }
  0xe2   :  { %v266_v35 = vadd.f32 %v265_v34, %v140_v33  ;;  %v311_v38 = vadd.f32 %v650_v29, %v262_v28 }
  0xe3   :  { %v312_v37 = vadd.f32 %v648_v25, %v264_v32 }
  0xe4   :  { %v313_v39 = vadd.f32 %v650_v29, %v266_v35 }
  0xe5   :  { %v473_v40 = vpack.c.bf16 %v312_v37, %v310_v36  ;;  %v144_v42 = vpop.f32.mrb[4].mxu1 }
  0xe6   :  { %v493_v41 = vpack.c.bf16 %v313_v39, %v311_v38  ;;  %v269_v43 = vpop.f32.mrb[4].mxu0  ;;  %v146_v45 = vpop.f32.mrb[5].mxu1 }
  0xe7   :  { %474 = vst [vmem:[%s697_s5] sm:$0xff] %v473_v40   ;;  %v270_v44 = vadd.f32 %v269_v43, %v144_v42  ;;  %v271_v46 = vpop.f32.mrb[5].mxu0  ;;  %v148_v48 = vpop.f32.mrb[6].mxu1 }
  0xe8   :  { %494 = vst [vmem:[%s698_s6] sm:$0xff] %v493_v41   ;;  %v272_v47 = vadd.f32 %v271_v46, %v146_v45  ;;  %v273_v49 = vpop.f32.mrb[6].mxu0  ;;  %v150_v51 = vpop.f32.mrb[7].mxu1 }
  0xe9   :  { %v274_v50 = vadd.f32 %v273_v49, %v148_v48  ;;  %v275_v52 = vpop.f32.mrb[7].mxu0  ;;  %v314_v54 = vadd.f32 %v648_v25, %v270_v44 }
  0xea   :  { %v276_v53 = vadd.f32 %v275_v52, %v150_v51  ;;  %v315_v56 = vadd.f32 %v650_v29, %v272_v47 }
  0xeb   :  { %v316_v55 = vadd.f32 %v648_v25, %v274_v50 }
  0xec   :  { %v317_v57 = vadd.f32 %v650_v29, %v276_v53 }
  0xed   :  { %v478_v58 = vpack.c.bf16 %v316_v55, %v314_v54  ;;  %v154_v60 = vpop.f32.mrb[8].mxu1 }
  0xee   :  { %v498_v59 = vpack.c.bf16 %v317_v57, %v315_v56  ;;  %v279_v61 = vpop.f32.mrb[8].mxu0  ;;  %v156_v63 = vpop.f32.mrb[9].mxu1 }
  0xef   :  { %510 = vst [vmem:[%s697_s5 + $0x8] sm:$0xff] %v478_v58   ;;  %v280_v62 = vadd.f32 %v279_v61, %v154_v60  ;;  %v281_v0 = vpop.f32.mrb[9].mxu0  ;;  %v158_v2 = vpop.f32.mrb[10].mxu1 }
  0xf0   :  { %513 = vst [vmem:[%s698_s6 + $0x8] sm:$0xff] %v498_v59   ;;  %v282_v1 = vadd.f32 %v281_v0, %v156_v63  ;;  %v283_v3 = vpop.f32.mrb[10].mxu0  ;;  %v160_v5 = vpop.f32.mrb[11].mxu1 }
  0xf1   :  { %v284_v4 = vadd.f32 %v283_v3, %v158_v2  ;;  %v285_v6 = vpop.f32.mrb[11].mxu0  ;;  %v318_v8 = vadd.f32 %v648_v25, %v280_v62 }
  0xf2   :  { %v286_v7 = vadd.f32 %v285_v6, %v160_v5  ;;  %v319_v10 = vadd.f32 %v650_v29, %v282_v1 }
  0xf3   :  { %v320_v9 = vadd.f32 %v648_v25, %v284_v4 }
  0xf4   :  { %v321_v11 = vadd.f32 %v650_v29, %v286_v7 }
  0xf5   :  { %v483_v12 = vpack.c.bf16 %v320_v9, %v318_v8  ;;  %v164_v14 = vpop.f32.mrb[12].mxu1 }
  0xf6   :  { %v503_v13 = vpack.c.bf16 %v321_v11, %v319_v10  ;;  %v289_v15 = vpop.f32.mrb[12].mxu0  ;;  %v166_v17 = vpop.f32.mrb[13].mxu1 }
  0xf7   :  { %511 = vst [vmem:[%s697_s5 + $0x10] sm:$0xff] %v483_v12   ;;  %v290_v16 = vadd.f32 %v289_v15, %v164_v14  ;;  %v291_v18 = vpop.f32.mrb[13].mxu0  ;;  %v168_v20 = vpop.f32.mrb[14].mxu1 }
  0xf8   :  { %514 = vst [vmem:[%s698_s6 + $0x10] sm:$0xff] %v503_v13   ;;  %v292_v19 = vadd.f32 %v291_v18, %v166_v17  ;;  %v293_v21 = vpop.f32.mrb[14].mxu0  ;;  %v170_v23 = vpop.f32.mrb[15].mxu1 }
  0xf9   :  { %v294_v22 = vadd.f32 %v293_v21, %v168_v20  ;;  %v295_v24 = vpop.f32.mrb[15].mxu0  ;;  %v322_v27 = vadd.f32 %v648_v25, %v290_v16 }
  0xfa   :  { %v296_v26 = vadd.f32 %v295_v24, %v170_v23  ;;  %v323_v30 = vadd.f32 %v650_v29, %v292_v19 }
  0xfb   :  { %v324_v28 = vadd.f32 %v648_v25, %v294_v22 }
  0xfc   :  { %v325_v31 = vadd.f32 %v650_v29, %v296_v26 }
  0xfd   :  { %v488_v32 = vpack.c.bf16 %v324_v28, %v322_v27 }
  0xfe   :  { %v508_v33 = vpack.c.bf16 %v325_v31, %v323_v30 }
  0xff   :  { %512 = vst [vmem:[%s697_s5 + $0x18] sm:$0xff] %v488_v32  }
 0x100   :  { %515 = vst [vmem:[%s698_s6 + $0x18] sm:$0xff] %v508_v33  }

// kernel: classifier_forward.4
= control target key start
LH: loop header
LB: loop body
LE: loop exit
PB: predicated region body
PF: predicated region fallthrough
CT: control target
= control target key end

     0   :  { %v433_v1 = vmov 0   ;;  %v47_v29 = vlaneseq  ;;  %s558_s1 = inlined_call_operand.vmem [shape: bf16[128,256], index: 1, kind: input, shape index: {}]   ;;  %s559_s0 = inlined_call_operand.vmem [shape: f32[64,128], index: 0, kind: input, shape index: {}]   ;;  %s560_s2 = inlined_call_operand.vmem [shape: f32[1,256], index: 2, kind: input, shape index: {}]   ;;  %s561_s3 = inlined_call_operand.vmem [shape: bf16[64,128], index: 3, kind: output, shape index: {0}]   ;;  %s562_s4 = inlined_call_operand.vmem [shape: bf16[64,128], index: 4, kind: output, shape index: {1}]  }
   0x1   :  { %v409_v0 = vld [vmem:[%s558_s1 + $0x4] ss:$8 sps:$4 sm:$0xff]   ;;  %169 = vmatprep.mubr.bf16.mxu0 %v433_v1  ;;  %189 = vmatprep.mubr.bf16.mxu1 %v433_v1  ;;  %v411_v2 = vld [vmem:[%s558_s1] ss:$8 sps:$4 sm:$0xff]   ;;  %v412_v3 = vld [vmem:[%s558_s1 + $0x14] ss:$8 sps:$4 sm:$0xff]  }
   0x2   :  { %137 = vmatprep.subr.bf16.mxu0 %v409_v0  ;;  %392 = vmatprep.subr.bf16.mxu1 %v409_v0  ;;  %v414_v4 = vld [vmem:[%s558_s1 + $0x10] ss:$8 sps:$4 sm:$0xff]   ;;  %v415_v5 = vld [vmem:[%s558_s1 + $0x24] ss:$8 sps:$4 sm:$0xff]   ;;  %v417_v6 = vld [vmem:[%s558_s1 + $0x20] ss:$8 sps:$4 sm:$0xff]  }
   0x3   :  { %138 = vmatpush1.bf16.msra.mxu0 %v411_v2  ;;  %400 = vmatpush1.bf16.msra.mxu1 %v411_v2  ;;  %v418_v7 = vld [vmem:[%s558_s1 + $0x34] ss:$8 sps:$4 sm:$0xff]   ;;  %v420_v8 = vld [vmem:[%s558_s1 + $0x30] ss:$8 sps:$4 sm:$0xff]   ;;  %v421_v9 = vld [vmem:[%s558_s1 + $0x44] ss:$8 sps:$4 sm:$0xff]  }
   0x4   :  { %139 = vmatprep.subr.bf16.mxu0 %v412_v3  ;;  %393 = vmatprep.subr.bf16.mxu1 %v412_v3  ;;  %v423_v10 = vld [vmem:[%s558_s1 + $0x40] ss:$8 sps:$4 sm:$0xff]   ;;  %v424_v11 = vld [vmem:[%s558_s1 + $0x54] ss:$8 sps:$4 sm:$0xff]   ;;  %v426_v12 = vld [vmem:[%s558_s1 + $0x50] ss:$8 sps:$4 sm:$0xff]  }
   0x5   :  { %v427_v13 = vld [vmem:[%s558_s1 + $0x64] ss:$8 sps:$4 sm:$0xff]   ;;  %v429_v14 = vld [vmem:[%s558_s1 + $0x60] ss:$8 sps:$4 sm:$0xff]   ;;  %v430_v15 = vld [vmem:[%s558_s1 + $0x74] ss:$8 sps:$4 sm:$0xff]  }
   0x6   :  { %v432_v16 = vld [vmem:[%s558_s1 + $0x70] ss:$8 sps:$4 sm:$0xff]   ;;  %v17_v17 = vld [vmem:[%s559_s0] sm:$0xff]  ;;  %v18_v18 = vld [vmem:[%s559_s0 + $0x8] sm:$0xff]  ;;  %v48_v30 = vshrl.u32 %v47_v29, 7 }
   0x7   :  { %140 = vmatpush1.bf16.msra.mxu0 %v414_v4  ;;  %401 = vmatpush1.bf16.msra.mxu1 %v414_v4  ;;  %v21_v19 = vld [vmem:[%s559_s0 + $0x20] sm:$0xff]  ;;  %v22_v20 = vld [vmem:[%s559_s0 + $0x28] sm:$0xff]  ;;  %v25_v21 = vpack.c.bf16 %v18_v18, %v17_v17  ;;  %v19_v23 = vld [vmem:[%s559_s0 + $0x10] sm:$0xff] }
   0x8   :  { %141 = vmatprep.subr.bf16.mxu0 %v415_v5  ;;  %394 = vmatprep.subr.bf16.mxu1 %v415_v5  ;;  %v27_v22 = vpack.c.bf16 %v22_v20, %v21_v19  ;;  %v20_v24 = vld [vmem:[%s559_s0 + $0x18] sm:$0xff]  ;;  %v23_v25 = vld [vmem:[%s559_s0 + $0x30] sm:$0xff]  ;;  %v49_v31 = vsub.s32 0, %v48_v30  ;;  %v45_v32 = vld [vmem:[%s560_s2] sm:$0x3]  ;;  %v53_v33 = vsub.s32 1, %v48_v30 }
   0x9   :  { %v24_v26 = vld [vmem:[%s559_s0 + $0x38] sm:$0xff]  ;;  %v26_v27 = vpack.c.bf16 %v20_v24, %v19_v23 }
   0xa   :  { %v28_v28 = vpack.c.bf16 %v24_v26, %v23_v25  ;;  %v50_v34 = vrot.slane %v45_v32, %v49_v31  ;;  %v54_v37 = vrot.slane %v45_v32, %v53_v33 }
   0xb   :  { %142 = vmatpush1.bf16.msra.mxu0 %v417_v6  ;;  %402 = vmatpush1.bf16.msra.mxu1 %v417_v6 }
   0xc   :  { %143 = vmatprep.subr.bf16.mxu0 %v418_v7  ;;  %395 = vmatprep.subr.bf16.mxu1 %v418_v7 }
   0xf   :  { %144 = vmatpush1.bf16.msra.mxu0 %v420_v8  ;;  %403 = vmatpush1.bf16.msra.mxu1 %v420_v8 }
  0x10   :  { %145 = vmatprep.subr.bf16.mxu0 %v421_v9  ;;  %396 = vmatprep.subr.bf16.mxu1 %v421_v9 }
  0x13   :  { %146 = vmatpush1.bf16.msra.mxu0 %v423_v10  ;;  %404 = vmatpush1.bf16.msra.mxu1 %v423_v10 }
  0x14   :  { %147 = vmatprep.subr.bf16.mxu0 %v424_v11  ;;  %397 = vmatprep.subr.bf16.mxu1 %v424_v11 }
  0x17   :  { %148 = vmatpush1.bf16.msra.mxu0 %v426_v12  ;;  %405 = vmatpush1.bf16.msra.mxu1 %v426_v12 }
  0x18   :  { %149 = vmatprep.subr.bf16.mxu0 %v427_v13  ;;  %398 = vmatprep.subr.bf16.mxu1 %v427_v13 }
  0x1b   :  { %150 = vmatpush1.bf16.msra.mxu0 %v429_v14  ;;  %406 = vmatpush1.bf16.msra.mxu1 %v429_v14 }
  0x1c   :  { %151 = vmatprep.subr.bf16.mxu0 %v430_v15  ;;  %399 = vmatprep.subr.bf16.mxu1 %v430_v15 }
  0x1f   :  { %152 = vmatpush1.bf16.msra.mxu0 %v432_v16  ;;  %407 = vmatpush1.bf16.msra.mxu1 %v432_v16 }
  0x22   :  { %170 = vmatmul.mubr.bf16.vlgmr.msra.gmra.mrb[0].mxu0 %v25_v21  ;;  %190 = vmatmul.mubr.bf16.vlgmr.msra.gmra.mrb[0].mxu1 %v27_v22 }
  0x23   :  { %179 = vmatprep.mubr.bf16.mxu0 %v433_v1  ;;  %199 = vmatprep.mubr.bf16.mxu1 %v433_v1 }
  0x2a   :  { %180 = vmatmul.mubr.bf16.gmra.mrb[4].mxu0 %v26_v27  ;;  %200 = vmatmul.mubr.bf16.gmra.mrb[4].mxu1 %v28_v28 }
  0xf5   :  { %v171_v35 = vpop.f32.mrb[0].mxu0  ;;  %v191_v36 = vpop.f32.mrb[0].mxu1 }
  0xf6   :  { %v173_v38 = vpop.f32.mrb[1].mxu0  ;;  %v193_v39 = vpop.f32.mrb[1].mxu1  ;;  %v172_v42 = vadd.f32 %v171_v35, %v50_v34  ;;  %v192_v43 = vadd.f32 %v191_v36, %v50_v34 }
  0xf7   :  { %v175_v40 = vpop.f32.mrb[2].mxu0  ;;  %v195_v41 = vpop.f32.mrb[2].mxu1  ;;  %v174_v48 = vadd.f32 %v173_v38, %v54_v37  ;;  %v194_v49 = vadd.f32 %v193_v39, %v54_v37 }
  0xf8   :  { %v176_v44 = vadd.f32 %v175_v40, %v50_v34  ;;  %v196_v45 = vadd.f32 %v195_v41, %v50_v34  ;;  %v177_v46 = vpop.f32.mrb[3].mxu0  ;;  %v197_v47 = vpop.f32.mrb[3].mxu1 }
  0xf9   :  { %v178_v50 = vadd.f32 %v177_v46, %v54_v37  ;;  %v198_v51 = vadd.f32 %v197_v47, %v54_v37 }
  0xfa   :  { %v349_v52 = vpack.c.bf16 %v176_v44, %v172_v42  ;;  %v359_v53 = vpack.c.bf16 %v196_v45, %v192_v43 }
  0xfb   :  { %v369_v54 = vpack.c.bf16 %v178_v50, %v174_v48  ;;  %v379_v55 = vpack.c.bf16 %v198_v51, %v194_v49 }
  0xfc   :  { %350 = vst [vmem:[%s561_s3] sm:$0xff] %v349_v52   ;;  %387 = vst [vmem:[%s561_s3 + $0x10] sm:$0xff] %v359_v53  }
  0xfd   :  { %370 = vst [vmem:[%s562_s4] sm:$0xff] %v369_v54   ;;  %390 = vst [vmem:[%s562_s4 + $0x10] sm:$0xff] %v379_v55   ;;  %v181_v56 = vpop.f32.mrb[4].mxu0  ;;  %v201_v57 = vpop.f32.mrb[4].mxu1 }
  0xfe   :  { %v183_v58 = vpop.f32.mrb[5].mxu0  ;;  %v203_v59 = vpop.f32.mrb[5].mxu1  ;;  %v182_v62 = vadd.f32 %v181_v56, %v50_v34  ;;  %v202_v63 = vadd.f32 %v201_v57, %v50_v34 }
  0xff   :  { %v185_v60 = vpop.f32.mrb[6].mxu0  ;;  %v205_v61 = vpop.f32.mrb[6].mxu1  ;;  %v184_v4 = vadd.f32 %v183_v58, %v54_v37  ;;  %v204_v5 = vadd.f32 %v203_v59, %v54_v37 }
 0x100   :  { %v186_v0 = vadd.f32 %v185_v60, %v50_v34  ;;  %v206_v1 = vadd.f32 %v205_v61, %v50_v34  ;;  %v187_v2 = vpop.f32.mrb[7].mxu0  ;;  %v207_v3 = vpop.f32.mrb[7].mxu1 }
 0x101   :  { %v188_v6 = vadd.f32 %v187_v2, %v54_v37  ;;  %v208_v7 = vadd.f32 %v207_v3, %v54_v37 }
 0x102   :  { %v354_v8 = vpack.c.bf16 %v186_v0, %v182_v62  ;;  %v364_v9 = vpack.c.bf16 %v206_v1, %v202_v63 }
 0x103   :  { %v374_v10 = vpack.c.bf16 %v188_v6, %v184_v4  ;;  %v384_v11 = vpack.c.bf16 %v208_v7, %v204_v5 }
 0x104   :  { %386 = vst [vmem:[%s561_s3 + $0x8] sm:$0xff] %v354_v8   ;;  %388 = vst [vmem:[%s561_s3 + $0x18] sm:$0xff] %v364_v9  }
 0x105   :  { %389 = vst [vmem:[%s562_s4 + $0x8] sm:$0xff] %v374_v10   ;;  %391 = vst [vmem:[%s562_s4 + $0x18] sm:$0xff] %v384_v11  }

// kernel: classifier_forward.7
= control target key start
LH: loop header
LB: loop body
LE: loop exit
PB: predicated region body
PF: predicated region fallthrough
CT: control target
= control target key end

     0   :  { %s1091_s29 = smov 0   ;;  %s1093_s30 = smov 0   ;;  %s1211_s0 = inlined_call_operand.vmem [shape: bf16[8,8,128], index: 0, kind: input, shape index: {}]   ;;  %s1212_s1 = inlined_call_operand.vmem [shape: bf16[8,8,128], index: 1, kind: input, shape index: {}]   ;;  %s1213_s2 = inlined_call_operand.vmem [shape: s32[8,1], index: 2, kind: input, shape index: {}]   ;;  %s1214_s3 = inlined_call_operand.vmem [shape: bf16[32,128], index: 3, kind: input, shape index: {}]   ;;  %s1215_s4 = inlined_call_operand.vmem [shape: bf16[32,128], index: 4, kind: input, shape index: {}]   ;;  %s1216_s5 = inlined_call_operand.vmem [shape: bf16[32,1], index: 5, kind: input, shape index: {}]   ;;  %s1217_s6 = inlined_call_operand.vmem [shape: bf16[32,1], index: 6, kind: input, shape index: {}]   ;;  %s1218_s7 = inlined_call_operand.<no memory space> [shape: f32[1,1], index: 7, kind: input, shape index: {}]   ;;  %s1219_s8 = inlined_call_operand.vmem [shape: f32[8,1], index: 8, kind: output, shape index: {}]  }
   0x1   :  { %v13_v0 = vstv %s1218_s7  ;;  %s1095_s9 = smov 0  }
   0x2   :  { %14 = vst [vmem:[#allocation4] sm:$0x1] %v13_v0 }
   0x3 LB: > { %s29_s7 = sadd.s32 1, %s1028_s30  ;;  %p879_p0 = scmp.ge.s32.totalorder %s1032_s9, 1  ;;  %s1032_s9 = sphi %s1095_s9, %s20_s9   ;;  %s1028_s30 = sphi %s1093_s30, %s1221_s30   ;;  %s1024_s29 = sphi %s1091_s29, %s1220_s29  }
   0x4   : > { %p30_p1 = scmp.ge.s32.totalorder %s29_s7, 8  ;;  %p307_p2 = scmp.lt.s32.totalorder %s1032_s9, 9 }
   0x6   : > { %s1223_s7 = smov (%p30_p1, %s29_s7), 0  ;;  %p308_p3 = pnand %p879_p0, %p307_p2 }
   0x7   : > { %p354_p4 = scmp.lt.s32.totalorder (!%p308_p3), %s1024_s29, 7  ;;  %s1113_s10 = ssub.s32 (!%p308_p3), 7, %s1024_s29 }
   0x8   : > { %311 = sbr.rel (%p308_p3) target bundleno = 993 (0x3e1), region = 52  ;;  %p362_p5 = scmp.lt.s32.totalorder (!%p308_p3), %s1113_s10, 7 }
   0x9   : > { %p882_p6 = scmp.ne.s32.totalorder (!%p308_p3), %s1024_s29, 0 }
   0xf   : > { %s355_s11 = scalar_select %p354_p4, %s1024_s29, 7 }
  0x10   : > { %s363_s12 = scalar_select %p362_p5, %s1113_s10, 7 }
  0x11   : > { %s880_s13 = sshll.u32 %s355_s11, 2  ;;  %382 = sbr.rel (%p882_p6) target bundleno = 24 (0x18), region = 56  ;;  %vm383_vm0 = vcmask (!%p882_p6), 261120   ;;  %v1034_v1 = vmov (!%p882_p6), 0.0  }
  0x12   : > { %s1121_s16 = scalar_lea.vmem %s1211_s0, %s880_s13  ;;  %s881_s17 = sshll.u32 %s363_s12, 2  ;;  %384 = vst.msk [vmem:[#allocation2] sm:$0xff] (!%p882_p6), %vm383_vm0, %v1034_v1  ;;  %385 = vst.msk [vmem:[#allocation2 + $0x8] sm:$0xff] (!%p882_p6), %vm383_vm0, %v1034_v1 }
  0x13   : > { %s1126_s20 = scalar_lea.vmem %s1212_s1, %s881_s17  ;;  %386 = vst.msk [vmem:[#allocation3] sm:$0xff] (!%p882_p6), %vm383_vm0, %v1034_v1  ;;  %387 = vst.msk [vmem:[#allocation3 + $0x8] sm:$0xff] (!%p882_p6), %vm383_vm0, %v1034_v1 }
  0x18 PF: > { %v982_v2 = vld [vmem:[%s1214_s3] sm:$0xff]   ;;  %v1035_v3 = vmov 0.0   ;;  %v984_v5 = vld [vmem:[%s1214_s3 + $0x8] sm:$0xff]   ;;  %vm1036_vm1 = vmmov 0   ;;  %s1037_s11 = smov 32   ;;  %vm420_vm2 = vcmask 261120   ;;  %v395_v36 = vstv %s1024_s29 }
  0x19   : > { %915 = vmatprep.subr.bf16.mxu0 %v1035_v3  ;;  %923 = vmatprep.subr.bf16.mxu1 %v1035_v3  ;;  %v983_v4 = vld [vmem:[%s1215_s4] sm:$0xff]   ;;  %v985_v6 = vld [vmem:[%s1215_s4 + $0x8] sm:$0xff]   ;;  %v1038_v27 = vmov 0   ;;  %v396_v41 = vstv %s1113_s10  ;;  %s1039_s14 = smov 64   ;;  %s1040_s10 = smov 96  }
  0x1a   : > { %916 = vmatpush3.bf16.msra.mxu0 %v982_v2  ;;  %919 = vmatprep.mubr.msk.bf16.mxu0 %vm1036_vm1, %v1035_v3  ;;  %v1141_v7 = vld [vmem:[#allocation2] sm:$0xff]  ;;  %v1143_v8 = vld [vmem:[#allocation2 + $0x8] sm:$0xff]  ;;  %v1145_v9 = vld [vmem:[#allocation3] sm:$0xff]  ;;  %p891_p7 = scmp.ne.s32.totalorder %s1024_s29, 7 }
  0x1b   : > { %924 = vmatpush3.bf16.msra.mxu1 %v983_v4  ;;  %917 = vmatprep.subr.bf16.mxu0 %v1035_v3  ;;  %v403_v10 = vpack.c.bf16 %v1143_v8, %v1141_v7  ;;  %v1151_v11 = vld [vmem:[#allocation3 + $0x8] sm:$0xff]  ;;  %v525_v13 = vld [vmem:[%s1121_s16] sm:$0xf]  ;;  %vm1042_vm7 = vmmov (!%p891_p7), 0   ;;  %vm781_vm8 = vcmask (!%p891_p7), 7168  }
  0x1c   : > { %925 = vmatprep.subr.bf16.mxu1 %v1035_v3  ;;  %927 = vmatprep.mubr.msk.bf16.mxu1 %vm1036_vm1, %v1035_v3  ;;  %v528_v14 = vld [vmem:[%s1126_s20] sm:$0xf]  ;;  %v526_v15 = vunpack.c.l.bf16 %v525_v13 }
  0x1d   : > { %549 = vrot.lane.b32.xlu1 %v1145_v9, %s1037_s11  ;;  %v469_v12 = vrot.slane %v403_v10, 4  ;;  %v529_v16 = vunpack.c.l.bf16 %v528_v14  ;;  %980 = vset.pattern.permute.xlu0 %v1038_v27  ;;  %v388_v39 = vld [vmem:[%s1213_s2] sm:$0xff]  ;;  %v1004_v14 = vld [vmem:[%s1217_s6 + $0x8] sm:$0xff] (!%p891_p7)  }
  0x1e   : > { %918 = vmatpush3.bf16.msra.mxu0 %v984_v5  ;;  %981 = vset.pattern.permute.xlu1 %v1038_v27  ;;  %vm399_vm3 = vcmp.lt.s32.totalorder %v395_v36, %v388_v39  ;;  %vm400_vm4 = vcmp.lt.s32.totalorder %v396_v41, %v388_v39  ;;  %v1003_v13 = vld [vmem:[%s1216_s5] sm:$0xff] (!%p891_p7)  }
  0x1f   : > { %926 = vmatpush3.bf16.msra.mxu1 %v985_v6  ;;  %v589_v44 = vsel %vm399_vm3, 1, %v1038_v27  ;;  %v590_v46 = vsel %vm400_vm4, 1, %v1038_v27 }
  0x21   : > { %920 = vmatmul.mubr.msk.bf16.vlgmr.msra.gmra.mrb[0].mxu0 %vm420_vm2, %v403_v10  ;;  %551 = vrot.lane.b32.xlu1 %v1151_v11, %s1037_s11 }
  0x22   : > { %928 = vmatmul.mubr.msk.bf16.vlgmr.msra.gmra.mrb[0].mxu1 %vm420_vm2, %v469_v12  ;;  %v1041_v12 = vmov (!%p891_p7), 0.0  }
  0x23   : > { %931 = vmatprep.subr.bf16.mxu0 (!%p891_p7), %v1041_v12  ;;  %939 = vmatprep.subr.bf16.mxu1 (!%p891_p7), %v1041_v12 }
  0x24   : > { %935 = vmatprep.mubr.msk.bf16.mxu0 (!%p891_p7), %vm1042_vm7, %v1041_v12  ;;  %940 = vmatpush3.bf16.msra.mxu1 (!%p891_p7), %v1003_v13 }
  0x25   : > { %941 = vmatprep.subr.bf16.mxu1 (!%p891_p7), %v1041_v12  ;;  %943 = vmatprep.mubr.msk.bf16.mxu1 (!%p891_p7), %vm1042_vm7, %v1041_v12 }
  0x8f   : > { %v550_v47 = vpop.permute.xlu1 %549 }
  0x93   : > { %v552_v49 = vpop.permute.xlu1 %551 }
  0xf4   : > { %v458_v17 = vpop.f32.mrb[0].mxu0 }
  0xf5   : > { %v527_v18 = vadd.f32 %v526_v15, %v458_v17  ;;  %v921_v19 = vpop.f32.mrb[1].mxu0  ;;  %v519_v20 = vpop.f32.mrb[0].mxu1  ;;  %v1005_v15 = vld [vmem:[%s1216_s5 + $0x8] sm:$0xff] (!%p891_p7)  }
  0xf6   : > { %v530_v21 = vadd.f32 %v529_v16, %v519_v20  ;;  %v461_v22 = vpop.f32.mrb[2].mxu0  ;;  %v929_v23 = vpop.f32.mrb[1].mxu1  ;;  %942 = vmatpush3.bf16.msra.mxu1 (!%p891_p7), %v1005_v15 }
  0xf7   : > { %986 = vtanh.f32 %v527_v18  ;;  %v922_v24 = vpop.f32.mrb[3].mxu0  ;;  %v522_v25 = vpop.f32.mrb[2].mxu1  ;;  %v889_v30 = vmul.f32 -1.442695, %v527_v18  ;;  %v898_v22 = vld [vmem:[#allocation4] ss:$0 sm:$0xff] (!%p891_p7) }
  0xf8   : > { %v930_v26 = vpop.f32.mrb[3].mxu1  ;;  %988 = vtanh.f32 %v530_v21  ;;  %v890_v31 = vmul.f32 -1.442695, %v530_v21 }
  0xf9   : > { %990 = vpow2.f32 %v889_v30 }
  0xfa   : > { %992 = vpow2.f32 %v890_v31 }
 0x101   : > { %v987_v28 = vpop.eup %986 }
 0x102   : > { %559 = vrot.lane.b32.xlu0 %v987_v28, %s1037_s11  ;;  %v989_v29 = vpop.eup %988 }
 0x103   : > { %v991_v32 = vpop.eup %990 }
 0x104   : > { %v537_v33 = vadd.f32 1.0, %v991_v32  ;;  %v993_v34 = vpop.eup %992 }
 0x105   : > { %v538_v35 = vadd.f32 1.0, %v993_v34 }
 0x106   : > { %561 = vrot.lane.b32.xlu0 %v989_v29, %s1037_s11  ;;  %994 = vrcp.f32 %v537_v33 }
 0x107   : > { %996 = vrcp.f32 %v538_v35 }
 0x110   : > { %v995_v37 = vpop.eup %994 }
 0x111   : > { %v997_v42 = vpop.eup %996  ;;  %v555_v48 = vmul.f32 %v995_v37, %v550_v47 }
 0x112   : > { %v556_v52 = vmul.f32 %v997_v42, %v552_v49 }
 0x174   : > { %v560_v38 = vpop.permute.xlu0 %559 }
 0x175   : > { %v565_v40 = vmul.f32 %v995_v37, %v560_v38 }
 0x177   : > { %569 = vrot.lane.b32.xlu0 %v565_v40, %s1037_s11 }
 0x178   : > { %v562_v43 = vpop.permute.xlu0 %561 }
 0x179   : > { %v566_v45 = vmul.f32 %v997_v42, %v562_v43 }
 0x17b   : > { %571 = vrot.lane.b32.xlu1 %v566_v45, %s1037_s11  ;;  %592 = vperm.xlu0 %980, %v589_v44  }
 0x17f   : > { %595 = vperm.xlu1 %981, %v590_v46   ;;  %603 = vrot.lane.b32.xlu0 %v1143_v8, %s1039_s14 }
 0x183   : > { %601 = vrot.lane.b32.xlu1 %v1141_v7, %s1039_s14 }
 0x1e9   : > { %v570_v50 = vpop.permute.xlu0 %569 }
 0x1ea   : > { %v575_v51 = vadd.f32 %v570_v50, %v555_v48 }
 0x1ec   : > { %998 = vtanh.f32 %v575_v51 }
 0x1ed   : > { %v572_v53 = vpop.permute.xlu1 %571 }
 0x1ee   : > { %v576_v54 = vadd.f32 %v572_v53, %v556_v52 }
 0x1f0   : > { %1000 = vtanh.f32 %v576_v54 }
 0x1f6   : > { %v999_v55 = vpop.eup %998 }
 0x1f7   : > { %581 = vrot.lane.b32.xlu1 %v999_v55, %s1037_s11 }
 0x1fa   : > { %v1001_v56 = vpop.eup %1000  ;;  %v593_v58 = vpop.permute.xlu0 %592 }
 0x1fb   : > { %623 = vrot.lane.b32.xlu1 %v1145_v9, %s1037_s11  ;;  %583 = vrot.lane.b32.xlu0 %v1001_v56, %s1037_s11  ;;  %vm597_vm5 = vcmp.eq.s32.totalorder %v593_v58, 1 }
 0x1fe   : > { %v596_v57 = vpop.permute.xlu1 %595  ;;  %v604_v60 = vpop.permute.xlu0 %603 }
 0x1ff   : > { %625 = vrot.lane.b32.xlu0 %v1151_v11, %s1037_s11  ;;  %vm598_vm6 = vcmp.eq.s32.totalorder %v596_v57, 1  ;;  %v1002_v11 = vld [vmem:[%s1217_s6] sm:$0xff] (!%p891_p7)  }
 0x200   : > { %932 = vmatpush3.bf16.msra.mxu0 (!%p891_p7), %v1002_v11 }
 0x201   : > { %933 = vmatprep.subr.bf16.mxu0 (!%p891_p7), %v1041_v12 }
 0x202   : > { %v602_v59 = vpop.permute.xlu1 %601 }
 0x204   : > { %934 = vmatpush3.bf16.msra.mxu0 (!%p891_p7), %v1004_v14 }
 0x269   : > { %v582_v61 = vpop.permute.xlu1 %581 }
 0x26a   : > { %v587_v62 = vmul.f32 %v995_v37, %v582_v61 }
 0x26c   : > { %v607_v63 = vsel %vm597_vm5, %v587_v62, %v602_v59 }
 0x26d   : > { %v624_v0 = vpop.permute.xlu1 %623  ;;  %611 = vrot.lane.b32.xlu1 %v607_v63, %s1039_s14  ;;  %v584_v1 = vpop.permute.xlu0 %583 }
 0x26e   : > { %v588_v2 = vmul.f32 %v997_v42, %v584_v1  ;;  %v629_v3 = vsel %vm597_vm5, %v575_v51, %v624_v0 }
 0x270   : > { %v608_v4 = vsel %vm598_vm6, %v588_v2, %v604_v60 }
 0x271   : > { %633 = vrot.lane.b32.xlu1 %v629_v3, %s1040_s10  ;;  %613 = vrot.lane.b32.xlu0 %v608_v4, %s1039_s14  ;;  %v626_v5 = vpop.permute.xlu0 %625 }
 0x272   : > { %v630_v6 = vsel %vm598_vm6, %v576_v54, %v626_v5 }
 0x275   : > { %635 = vrot.lane.b32.xlu0 %v630_v6, %s1040_s10 }
 0x2df   : > { %v612_v7 = vpop.permute.xlu1 %611 }
 0x2e0   : > { %617 = vst.msk [vmem:[#allocation2] sm:$0xff] %vm420_vm2, %v612_v7 }
 0x2e2   : > { %644 = sbr.rel (%p891_p7) target bundleno = 993 (0x3e1), region = 60 }
 0x2e3   : > { %v634_v8 = vpop.permute.xlu1 %633  ;;  %v614_v9 = vpop.permute.xlu0 %613 }
 0x2e4   : > { %639 = vst.msk [vmem:[#allocation3] sm:$0xff] %vm420_vm2, %v634_v8  ;;  %618 = vst.msk [vmem:[#allocation2 + $0x8] sm:$0xff] %vm420_vm2, %v614_v9 }
 0x2e7   : > { %v636_v10 = vpop.permute.xlu0 %635  ;;  %v645_v17 = vld [vmem:[#allocation2] sm:$0xff] (!%p891_p7) }
 0x2e8   : > { %640 = vst.msk [vmem:[#allocation3 + $0x8] sm:$0xff] %vm420_vm2, %v636_v10  ;;  %v647_v19 = vpack.c.bf16 (!%p891_p7), %v645_v17, %v645_v17 }
 0x2ea   : > { %944 = vmatmul.mubr.msk.bf16.vlgmr.msra.gmra.mrb[0].mxu1 %vm420_vm2, %v647_v19 }
 0x2eb   : > { %v646_v16 = vld [vmem:[#allocation2 + $0x8] sm:$0xff] }
 0x2ec   : > { %v648_v18 = vpack.c.bf16 %v646_v16, %v646_v16 }
 0x2ee   : > { %936 = vmatmul.mubr.msk.bf16.vlgmr.msra.gmra.mrb[0].mxu0 %vm420_vm2, %v648_v18 }
 0x3bd   : > { %v761_v21 = vpop.f32.mrb[0].mxu1 }
 0x3be   : > { %v945_v25 = vpop.f32.mrb[1].mxu1 }
 0x3bf   : > { %v764_v27 = vpop.f32.mrb[2].mxu1 }
 0x3c0   : > { %v946_v30 = vpop.f32.mrb[3].mxu1 }
 0x3c1   : > { %v706_v20 = vpop.f32.mrb[0].mxu0 }
 0x3c2   : > { %v937_v23 = vpop.f32.mrb[1].mxu0  ;;  %v762_v24 = vadd.f32 %v761_v21, %v706_v20 }
 0x3c3   : > { %v709_v26 = vpop.f32.mrb[2].mxu0 }
 0x3c4   : > { %v938_v28 = vpop.f32.mrb[3].mxu0  ;;  %v774_v29 = vadd.f32 %v898_v22, %v762_v24 }
 0x3c6   : > { %v899_v31 = vmul.f32 -1.442695, %v774_v29 }
 0x3c8   : > { %1006 = vpow2.f32 %v899_v31 }
 0x3d2   : > { %v1007_v32 = vpop.eup %1006 }
 0x3d3   : > { %v778_v33 = vadd.f32 1.0, %v1007_v32 }
 0x3d5   : > { %1008 = vrcp.f32 %v778_v33 }
 0x3df   : > { %v1009_v34 = vpop.eup %1008 }
 0x3e0   : > { %782 = vst.msk [vmem:[%s1219_s8] sm:$0xff] %vm781_vm8, %v1009_v34 }
 0x3e1 PF: > { %s20_s9 = sadd.s32 1, %s1032_s9   ;;  %s1220_s29 = smov %s1028_s30 }
 0x3e2   : > { %p17_p8 = scmp.ge.s32.totalorder %s20_s9, 10   ;;  %s1221_s30 = smov %s1223_s7 }
 0x3e4   :  { %19 = sbr.rel (!%p17_p8) target bundleno = 3 (0x3), region = 96 }

</bundles_post_ra>
